<compile_context>
chip_gen: v7x
topology: tpu7x:2x2x1
jax: 0.10.0
libtpu: 0.0.40
codegen_flags: <defaults>
</compile_context>

<pallas_src>
import functools
import math

import jax
import jax.numpy as jnp
from jax.experimental import pallas as pl
from jax.experimental.pallas import tpu as pltpu

EPS = 1e-6                      # LayerNorm(eps=1e-6)


def _vmem_limit_bytes():
    """Generation-aware scoped-VMEM budget (leave ~20% headroom)."""
    try:
        cap = int(pltpu.get_tpu_info().vmem_capacity_bytes)
    except Exception:
        cap = 64 * 1024 * 1024          # conservative (v7x) fallback
    return int(cap * 0.8)


VMEM_LIMIT = _vmem_limit_bytes()
BLOCK_M = 512                   # target token rows per grid step
BLOCK_Q = 256                   # target q rows per attention grid step
BLOCK_F = 512                   # target d_ff columns per FFN grid step


def _cparams(semantics):
    return pltpu.CompilerParams(
        dimension_semantics=tuple(semantics),
        vmem_limit_bytes=VMEM_LIMIT)


def _pick_block(n, target):
    """Largest divisor of n <= target, preferring multiples of 256/128/.../8."""
    if n <= target:
        return n
    for align in (256, 128, 64, 32, 16, 8):
        bm = target - (target % align)
        while bm >= align:
            if n % bm == 0:
                return bm
            bm -= align
    # TODO(synk): pad n to a multiple of an aligned block instead of a single
    # full-extent block for awkward (non power-of-two-ish) row counts.
    return n


# --------------------------------------------------------------------------
# In-kernel helpers
# --------------------------------------------------------------------------
def _layer_norm(x, a, b, feat):
    """Annotated-Transformer LayerNorm: a*(x-mean)/(std+eps)+b (unbiased std)."""
    x = x.astype(jnp.float32)
    mean = jnp.mean(x, axis=-1, keepdims=True)
    d = x - mean
    var = jnp.sum(d * d, axis=-1, keepdims=True) * (1.0 / (feat - 1))
    inv = pl.reciprocal(jnp.sqrt(var) + EPS, approx=True)   # EUP slot, ~free
    return a * d * inv + b


# --------------------------------------------------------------------------
# Pallas kernels
# --------------------------------------------------------------------------
def _ln_qkv_kernel(x_ref, a_ref, b_ref, wq_ref, bq_ref, wkv_ref, bkv_ref,
                   q_ref, kv_ref, *, feat):
    y = _layer_norm(x_ref[...], a_ref[...], b_ref[...], feat).astype(jnp.bfloat16)
    q = jnp.dot(y, wq_ref[...], preferred_element_type=jnp.float32) + bq_ref[...]
    kv = jnp.dot(y, wkv_ref[...], preferred_element_type=jnp.float32) + bkv_ref[...]
    q_ref[...] = q.astype(q_ref.dtype)
    kv_ref[...] = kv.astype(kv_ref.dtype)


def _ln_linear_kernel(x_ref, a_ref, b_ref, w_ref, bias_ref, o_ref, *, feat):
    y = _layer_norm(x_ref[...], a_ref[...], b_ref[...], feat).astype(jnp.bfloat16)
    acc = jnp.dot(y, w_ref[...], preferred_element_type=jnp.float32)
    o_ref[...] = (acc + bias_ref[...]).astype(o_ref.dtype)


def _linear_kernel(x_ref, w_ref, bias_ref, o_ref):
    x16 = x_ref[...].astype(jnp.bfloat16)
    acc = jnp.dot(x16, w_ref[...], preferred_element_type=jnp.float32)
    o_ref[...] = (acc + bias_ref[...]).astype(o_ref.dtype)


def _mha_o_residual_kernel(q_ref, kv_ref, m_ref, wo_ref, bo_ref, res_ref, o_ref,
                           *, heads, scale, causal):
    """Per (batch, q-tile) step: all heads, softmax, PV, o-proj and residual.

    q_ref:  (1, tq, D) bf16   kv_ref: (1, Sk, 2D) bf16 (K|V)
    m_ref:  (1, 1, Sk) int32 padding mask (1 = attend)
    wo_ref: (D, D) bf16       bo_ref: (1, D) f32
    res_ref/o_ref: (1, tq, D) bf16
    """
    tq, D = q_ref.shape[1], q_ref.shape[2]
    Sk = kv_ref.shape[1]
    dk = D // heads

    # Scale q once (tq*D muls) instead of each (tq, Sk) score block.
    q = (q_ref[0].astype(jnp.float32) * scale).astype(jnp.bfloat16)   # (tq, D)
    kv = kv_ref[0]                                                    # (Sk, 2D)
    k, v = kv[:, :D], kv[:, D:]

    valid = m_ref[0] != 0                                             # (1, Sk)
    if causal:
        # Causal ("subsequent") mask generated in-kernel: no (Sq, Sk) DMA.
        row = (pl.program_id(1) * tq
               + jax.lax.broadcasted_iota(jnp.int32, (tq, Sk), 0))
        col = jax.lax.broadcasted_iota(jnp.int32, (tq, Sk), 1)
        valid = jnp.logical_and(valid, col <= row)                    # (tq, Sk)

    neg = jnp.float32(-1e9)
    acc = jnp.zeros((tq, D), jnp.float32)
    for h in range(heads):                       # static loop; static slices
        sl = slice(h * dk, (h + 1) * dk)
        s = jax.lax.dot_general(q[:, sl], k[:, sl],
                                (((1,), (1,)), ((), ())),
                                preferred_element_type=jnp.float32)   # (tq, Sk)
        s = jnp.where(valid, s, neg)
        s = s - jnp.max(s, axis=-1, keepdims=True)
        p = jnp.exp(s)
        inv_l = pl.reciprocal(jnp.sum(p, axis=-1, keepdims=True), approx=True)
        pv = jnp.dot(p.astype(jnp.bfloat16), v[:, sl],
                     preferred_element_type=jnp.float32)              # (tq, dk)
        pv = (pv * inv_l).astype(jnp.bfloat16)   # normalize AFTER PV matmul
        # Fused output projection: accumulate this head directly into (tq, D).
        acc = acc + jnp.dot(pv, wo_ref[sl, :],
                            preferred_element_type=jnp.float32)
    out = res_ref[0].astype(jnp.float32) + acc + bo_ref[...]
    o_ref[0] = out.astype(o_ref.dtype)
    # TODO(synk): for very long Sk (>~2-4K on v7x) switch the Sk dimension to a
    # flash-style online-softmax grid axis so VMEM is bounded independent of Sk.


def _ln_ffn_residual_kernel(x_ref, a_ref, b_ref, w1_ref, b1_ref, w2_ref, b2_ref,
                            o_ref, y_scr, acc_scr, *, feat):
    """Pre-norm FFN with residual, tiled over d_ff (grid axis 1, 'arbitrary')."""
    j = pl.program_id(1)

    @pl.when(j == 0)
    def _():
        y_scr[...] = _layer_norm(x_ref[...], a_ref[...], b_ref[...],
                                 feat).astype(jnp.bfloat16)
        acc_scr[...] = jnp.zeros_like(acc_scr)

    h = jnp.dot(y_scr[...], w1_ref[...],
                preferred_element_type=jnp.float32) + b1_ref[...]
    h = jnp.maximum(h, 0.0).astype(jnp.bfloat16)              # ReLU
    acc_scr[...] += jnp.dot(h, w2_ref[...], preferred_element_type=jnp.float32)

    @pl.when(j == pl.num_programs(1) - 1)
    def _():
        out = x_ref[...].astype(jnp.float32) + acc_scr[...] + b2_ref[...]
        o_ref[...] = out.astype(o_ref.dtype)


def _layernorm_kernel(x_ref, a_ref, b_ref, o_ref, *, feat):
    o_ref[...] = _layer_norm(x_ref[...], a_ref[...], b_ref[...],
                             feat).astype(o_ref.dtype)


# --------------------------------------------------------------------------
# pallas_call wrappers (tiled over M = B*S, weights resident via (0,0) maps)
# --------------------------------------------------------------------------
def ln_qkv(x2d, a, b, wq, bq, wkv, bkv):
    M, D = x2d.shape
    Nq, Nkv = wq.shape[1], wkv.shape[1]
    bm = _pick_block(M, BLOCK_M)
    return pl.pallas_call(
        functools.partial(_ln_qkv_kernel, feat=D),
        out_shape=(jax.ShapeDtypeStruct((M, Nq), jnp.bfloat16),
                   jax.ShapeDtypeStruct((M, Nkv), jnp.bfloat16)),
        grid=(M // bm,),
        in_specs=[
            pl.BlockSpec((bm, D), lambda i: (i, 0)),
            pl.BlockSpec((1, D), lambda i: (0, 0)),
            pl.BlockSpec((1, D), lambda i: (0, 0)),
            pl.BlockSpec((D, Nq), lambda i: (0, 0)),
            pl.BlockSpec((1, Nq), lambda i: (0, 0)),
            pl.BlockSpec((D, Nkv), lambda i: (0, 0)),
            pl.BlockSpec((1, Nkv), lambda i: (0, 0)),
        ],
        out_specs=(pl.BlockSpec((bm, Nq), lambda i: (i, 0)),
                   pl.BlockSpec((bm, Nkv), lambda i: (i, 0))),
        compiler_params=_cparams(("parallel",)),
    )(x2d, a.reshape(1, D), b.reshape(1, D),
      wq, bq.reshape(1, Nq), wkv, bkv.reshape(1, Nkv))


def ln_linear(x2d, a, b, w, bias):
    M, D = x2d.shape
    N = w.shape[1]
    bm = _pick_block(M, BLOCK_M)
    return pl.pallas_call(
        functools.partial(_ln_linear_kernel, feat=D),
        out_shape=jax.ShapeDtypeStruct((M, N), jnp.bfloat16),
        grid=(M // bm,),
        in_specs=[
            pl.BlockSpec((bm, D), lambda i: (i, 0)),
            pl.BlockSpec((1, D), lambda i: (0, 0)),
            pl.BlockSpec((1, D), lambda i: (0, 0)),
            pl.BlockSpec((D, N), lambda i: (0, 0)),
            pl.BlockSpec((1, N), lambda i: (0, 0)),
        ],
        out_specs=pl.BlockSpec((bm, N), lambda i: (i, 0)),
        compiler_params=_cparams(("parallel",)),
    )(x2d, a.reshape(1, D), b.reshape(1, D), w, bias.reshape(1, N))


def linear(x2d, w, bias):
    M, K = x2d.shape
    N = w.shape[1]
    bm = _pick_block(M, BLOCK_M)
    return pl.pallas_call(
        _linear_kernel,
        out_shape=jax.ShapeDtypeStruct((M, N), jnp.bfloat16),
        grid=(M // bm,),
        in_specs=[
            pl.BlockSpec((bm, K), lambda i: (i, 0)),
            pl.BlockSpec((K, N), lambda i: (0, 0)),
            pl.BlockSpec((1, N), lambda i: (0, 0)),
        ],
        out_specs=pl.BlockSpec((bm, N), lambda i: (i, 0)),
        compiler_params=_cparams(("parallel",)),
    )(x2d, w, bias.reshape(1, N))


def mha_o_residual(q, kv, pad_mask, wo, bo, res, heads, causal):
    """q: (B, Sq, D) bf16; kv: (B, Sk, 2D) bf16 (K|V);
    pad_mask: (B, 1, Sk) int32 (1 = attend); res: (B, Sq, D) bf16.
    Returns res + MHA(q, kv) @ wo + bo, in bf16."""
    B, Sq, D = q.shape
    Sk, Dkv = kv.shape[1], kv.shape[2]
    tq = _pick_block(Sq, BLOCK_Q)
    scale = 1.0 / math.sqrt(D // heads)
    return pl.pallas_call(
        functools.partial(_mha_o_residual_kernel,
                          heads=heads, scale=scale, causal=causal),
        out_shape=jax.ShapeDtypeStruct((B, Sq, D), jnp.bfloat16),
        grid=(B, Sq // tq),
        in_specs=[
            pl.BlockSpec((1, tq, D), lambda b, i: (b, i, 0)),
            pl.BlockSpec((1, Sk, Dkv), lambda b, i: (b, 0, 0)),
            pl.BlockSpec((1, 1, Sk), lambda b, i: (b, 0, 0)),
            pl.BlockSpec((D, D), lambda b, i: (0, 0)),
            pl.BlockSpec((1, D), lambda b, i: (0, 0)),
            pl.BlockSpec((1, tq, D), lambda b, i: (b, i, 0)),
        ],
        out_specs=pl.BlockSpec((1, tq, D), lambda b, i: (b, i, 0)),
        compiler_params=_cparams(("parallel", "parallel")),
    )(q, kv, pad_mask, wo, bo.reshape(1, D), res)


def ln_ffn_residual(x2d, a, b, w1, b1, w2, b2):
    M, D = x2d.shape
    F = w1.shape[1]
    bm = _pick_block(M, BLOCK_M)
    bf = _pick_block(F, BLOCK_F)
    return pl.pallas_call(
        functools.partial(_ln_ffn_residual_kernel, feat=D),
        out_shape=jax.ShapeDtypeStruct((M, D), jnp.bfloat16),
        grid=(M // bm, F // bf),
        in_specs=[
            pl.BlockSpec((bm, D), lambda i, j: (i, 0)),
            pl.BlockSpec((1, D), lambda i, j: (0, 0)),
            pl.BlockSpec((1, D), lambda i, j: (0, 0)),
            pl.BlockSpec((D, bf), lambda i, j: (0, j)),
            pl.BlockSpec((1, bf), lambda i, j: (0, j)),
            pl.BlockSpec((bf, D), lambda i, j: (j, 0)),
            pl.BlockSpec((1, D), lambda i, j: (0, 0)),
        ],
        out_specs=pl.BlockSpec((bm, D), lambda i, j: (i, 0)),
        scratch_shapes=[pltpu.VMEM((bm, D), jnp.bfloat16),   # LN(x), computed once
                        pltpu.VMEM((bm, D), jnp.float32)],   # f32 accumulator
        compiler_params=_cparams(("parallel", "arbitrary")),
    )(x2d, a.reshape(1, D), b.reshape(1, D),
      w1, b1.reshape(1, F), w2, b2.reshape(1, D))


def layernorm(x2d, a, b, out_dtype=jnp.float32):
    M, D = x2d.shape
    bm = _pick_block(M, BLOCK_M)
    return pl.pallas_call(
        functools.partial(_layernorm_kernel, feat=D),
        out_shape=jax.ShapeDtypeStruct((M, D), out_dtype),
        grid=(M // bm,),
        in_specs=[
            pl.BlockSpec((bm, D), lambda i: (i, 0)),
            pl.BlockSpec((1, D), lambda i: (0, 0)),
            pl.BlockSpec((1, D), lambda i: (0, 0)),
        ],
        out_specs=pl.BlockSpec((bm, D), lambda i: (i, 0)),
        compiler_params=_cparams(("parallel",)),
    )(x2d, a.reshape(1, D), b.reshape(1, D))


# --------------------------------------------------------------------------
# Decoder forward (parameter plumbing + free reshapes only — no transposes)
# --------------------------------------------------------------------------
def decoder_forward(params, x, memory, src_mask, tgt_mask, H):
    """src_mask / tgt_mask: (B, 1, S) padding masks (1 = attend). The causal
    ("subsequent") part of the target mask is generated inside the attention
    kernel (standard decoder semantics: tgt = pad & subsequent), avoiding an
    (S, S) int32 DMA per layer."""
    B, St, D = x.shape
    Ss = memory.shape[1]
    x2d = x.reshape(B * St, D).astype(jnp.bfloat16)
    mem2d = memory.reshape(B * Ss, D).astype(jnp.bfloat16)
    src_m = src_mask.astype(jnp.int32)
    tgt_m = tgt_mask.astype(jnp.int32)

    for lp in params["layers"]:
        # sublayer 0: pre-norm masked self-attention + o-proj + residual (fused)
        q, kv = ln_qkv(x2d, lp["ln0_a"], lp["ln0_b"],
                       lp["sa_wq"], lp["sa_bq"], lp["sa_wkv"], lp["sa_bkv"])
        x2d = mha_o_residual(q.reshape(B, St, D), kv.reshape(B, St, 2 * D),
                             tgt_m, lp["sa_wo"], lp["sa_bo"],
                             x2d.reshape(B, St, D), H, causal=True
                             ).reshape(B * St, D)

        # sublayer 1: pre-norm source attention + o-proj + residual (fused)
        q = ln_linear(x2d, lp["ln1_a"], lp["ln1_b"], lp["ca_wq"], lp["ca_bq"])
        kv = linear(mem2d, lp["ca_wkv"], lp["ca_bkv"])
        x2d = mha_o_residual(q.reshape(B, St, D), kv.reshape(B, Ss, 2 * D),
                             src_m, lp["ca_wo"], lp["ca_bo"],
                             x2d.reshape(B, St, D), H, causal=False
                             ).reshape(B * St, D)

        # sublayer 2: pre-norm positionwise FFN + residual (all fused, F-tiled)
        x2d = ln_ffn_residual(x2d, lp["ln2_a"], lp["ln2_b"],
                              lp["ff_w1"], lp["ff_b1"], lp["ff_w2"], lp["ff_b2"])

    # final LayerNorm (Decoder.norm) — back to float32 like the reference
    return layernorm(x2d, params["norm_a"], params["norm_b"]).reshape(B, St, D)


def init_params(key, n_layers, d_model, d_ff):
    def dense(k, fan_in, fan_out):
        kw, kb = jax.random.split(k)
        w = (jax.random.normal(kw, (fan_in, fan_out), jnp.float32)
             / jnp.sqrt(fan_in)).astype(jnp.bfloat16)
        b = 0.01 * jax.random.normal(kb, (fan_out,), jnp.float32)
        return w, b

    layers = []
    for _ in range(n_layers):
        keys = jax.random.split(key, 9)
        key = keys[0]
        sa_wq, sa_bq = dense(keys[1], d_model, d_model)
        sa_wkv, sa_bkv = dense(keys[2], d_model, 2 * d_model)
        sa_wo, sa_bo = dense(keys[3], d_model, d_model)
        ca_wq, ca_bq = dense(keys[4], d_model, d_model)
        ca_wkv, ca_bkv = dense(keys[5], d_model, 2 * d_model)
        ca_wo, ca_bo = dense(keys[6], d_model, d_model)
        ff_w1, ff_b1 = dense(keys[7], d_model, d_ff)
        ff_w2, ff_b2 = dense(keys[8], d_ff, d_model)
        layers.append(dict(
            sa_wq=sa_wq, sa_bq=sa_bq, sa_wkv=sa_wkv, sa_bkv=sa_bkv,
            sa_wo=sa_wo, sa_bo=sa_bo,
            ca_wq=ca_wq, ca_bq=ca_bq, ca_wkv=ca_wkv, ca_bkv=ca_bkv,
            ca_wo=ca_wo, ca_bo=ca_bo,
            ff_w1=ff_w1, ff_b1=ff_b1, ff_w2=ff_w2, ff_b2=ff_b2,
            ln0_a=jnp.ones((d_model,), jnp.float32), ln0_b=jnp.zeros((d_model,), jnp.float32),
            ln1_a=jnp.ones((d_model,), jnp.float32), ln1_b=jnp.zeros((d_model,), jnp.float32),
            ln2_a=jnp.ones((d_model,), jnp.float32), ln2_b=jnp.zeros((d_model,), jnp.float32),
        ))
    return dict(layers=layers,
                norm_a=jnp.ones((d_model,), jnp.float32),
                norm_b=jnp.zeros((d_model,), jnp.float32))


if __name__ == "__main__":
    B, S_TGT, S_SRC, D, H, D_FF, N_LAYERS = 2, 8, 8, 32, 4, 64, 2

    key = jax.random.PRNGKey(0)
    k_p, k_x, k_m = jax.random.split(key, 3)

    params = init_params(k_p, N_LAYERS, D, D_FF)
    x = jax.random.normal(k_x, (B, S_TGT, D), jnp.float32)
    memory = jax.random.normal(k_m, (B, S_SRC, D), jnp.float32)
    # Padding masks (1 = attend); causal part of the target mask is in-kernel.
    src_mask = jnp.ones((B, 1, S_SRC), jnp.int32)
    tgt_mask = jnp.ones((B, 1, S_TGT), jnp.int32)

    fwd = jax.jit(functools.partial(decoder_forward, H=H))
    out = jax.block_until_ready(fwd(params, x, memory, src_mask, tgt_mask))

    assert out.shape == (B, S_TGT, D)
    assert bool(jnp.all(jnp.isfinite(out)))
    print("KERNEL_OK")
</pallas_src>

<mosaic_0001>
module attributes {stable_mosaic.version = 11 : i64} {
  func.func @_ln_qkv_kernel(%arg0: i32, %arg1: memref<16x32xbf16, #tpu.memory_space<vmem>>, %arg2: memref<1x32xf32, #tpu.memory_space<vmem>>, %arg3: memref<1x32xf32, #tpu.memory_space<vmem>>, %arg4: memref<32x32xbf16, #tpu.memory_space<vmem>>, %arg5: memref<1x32xf32, #tpu.memory_space<vmem>>, %arg6: memref<32x64xbf16, #tpu.memory_space<vmem>>, %arg7: memref<1x64xf32, #tpu.memory_space<vmem>>, %arg8: memref<16x32xbf16, #tpu.memory_space<vmem>>, %arg9: memref<16x64xbf16, #tpu.memory_space<vmem>>) attributes {dimension_semantics = [#tpu.dimension_semantics<parallel>], iteration_bounds = array<i64: 1>, scalar_prefetch = 0 : i64, scratch_operands = 0 : i64, tpu.core_type = #tpu.core_type<tc>, window_params = [{transform_indices = @transform_0, window_bounds = array<i64: 16, 32>}, {pipeline_mode = #tpu.pipeline_mode<synchronous>, transform_indices = @transform_1, window_bounds = array<i64: 1, 32>}, {pipeline_mode = #tpu.pipeline_mode<synchronous>, transform_indices = @transform_2, window_bounds = array<i64: 1, 32>}, {pipeline_mode = #tpu.pipeline_mode<synchronous>, transform_indices = @transform_3, window_bounds = array<i64: 32, 32>}, {pipeline_mode = #tpu.pipeline_mode<synchronous>, transform_indices = @transform_4, window_bounds = array<i64: 1, 32>}, {pipeline_mode = #tpu.pipeline_mode<synchronous>, transform_indices = @transform_5, window_bounds = array<i64: 32, 64>}, {pipeline_mode = #tpu.pipeline_mode<synchronous>, transform_indices = @transform_6, window_bounds = array<i64: 1, 64>}, {transform_indices = @transform_7, window_bounds = array<i64: 16, 32>}, {transform_indices = @transform_8, window_bounds = array<i64: 16, 64>}]} {
    %c0 = arith.constant 0 : index
    %c0_0 = arith.constant 0 : index
    %0 = vector.load %arg1[%c0, %c0_0] : memref<16x32xbf16, #tpu.memory_space<vmem>>, vector<16x32xbf16>
    %c0_1 = arith.constant 0 : index
    %c0_2 = arith.constant 0 : index
    %1 = vector.load %arg2[%c0_1, %c0_2] : memref<1x32xf32, #tpu.memory_space<vmem>>, vector<1x32xf32>
    %c0_3 = arith.constant 0 : index
    %c0_4 = arith.constant 0 : index
    %2 = vector.load %arg3[%c0_3, %c0_4] : memref<1x32xf32, #tpu.memory_space<vmem>>, vector<1x32xf32>
    %3 = arith.extf %0 : vector<16x32xbf16> to vector<16x32xf32>
    %cst = arith.constant dense<0.000000e+00> : vector<16xf32>
    %4 = vector.multi_reduction <add>, %3, %cst [1] : vector<16x32xf32> to vector<16xf32>
    %5 = vector.shape_cast %4 : vector<16xf32> to vector<16x1xf32>
    %cst_5 = arith.constant 3.200000e+01 : f32
    %6 = vector.broadcast %cst_5 : f32 to vector<16x1xf32>
    %7 = arith.divf %5, %6 : vector<16x1xf32>
    %8 = vector.broadcast %7 : vector<16x1xf32> to vector<16x32xf32>
    %9 = arith.subf %3, %8 : vector<16x32xf32>
    %10 = arith.mulf %9, %9 : vector<16x32xf32>
    %cst_6 = arith.constant dense<0.000000e+00> : vector<16xf32>
    %11 = vector.multi_reduction <add>, %10, %cst_6 [1] : vector<16x32xf32> to vector<16xf32>
    %12 = vector.shape_cast %11 : vector<16xf32> to vector<16x1xf32>
    %cst_7 = arith.constant 0.0322580636 : f32
    %13 = vector.broadcast %cst_7 : f32 to vector<16x1xf32>
    %14 = arith.mulf %12, %13 : vector<16x1xf32>
    %15 = math.sqrt %14 : vector<16x1xf32>
    %cst_8 = arith.constant 9.99999997E-7 : f32
    %16 = vector.broadcast %cst_8 : f32 to vector<16x1xf32>
    %17 = arith.addf %15, %16 : vector<16x1xf32>
    %18 = tpu.reciprocal %17 {approx = true} : vector<16x1xf32> -> vector<16x1xf32>
    %19 = vector.broadcast %1 : vector<1x32xf32> to vector<16x32xf32>
    %20 = arith.mulf %19, %9 : vector<16x32xf32>
    %21 = vector.broadcast %18 : vector<16x1xf32> to vector<16x32xf32>
    %22 = arith.mulf %20, %21 : vector<16x32xf32>
    %23 = vector.broadcast %2 : vector<1x32xf32> to vector<16x32xf32>
    %24 = arith.addf %22, %23 : vector<16x32xf32>
    %25 = arith.truncf %24 : vector<16x32xf32> to vector<16x32xbf16>
    %c0_9 = arith.constant 0 : index
    %c0_10 = arith.constant 0 : index
    %26 = vector.load %arg4[%c0_9, %c0_10] : memref<32x32xbf16, #tpu.memory_space<vmem>>, vector<32x32xbf16>
    %cst_11 = arith.constant dense<0.000000e+00> : vector<16x32xf32>
    %27 = tpu.matmul %25, %26, %cst_11 {dimension_numbers = #tpu.dot_dimension_numbers<[1], [0], [0], [1], [0, 0, 1, 1], [], []>} : vector<16x32xbf16>, vector<32x32xbf16>, vector<16x32xf32> -> vector<16x32xf32>
    %c0_12 = arith.constant 0 : index
    %c0_13 = arith.constant 0 : index
    %28 = vector.load %arg5[%c0_12, %c0_13] : memref<1x32xf32, #tpu.memory_space<vmem>>, vector<1x32xf32>
    %29 = vector.broadcast %28 : vector<1x32xf32> to vector<16x32xf32>
    %30 = arith.addf %27, %29 : vector<16x32xf32>
    %c0_14 = arith.constant 0 : index
    %c0_15 = arith.constant 0 : index
    %31 = vector.load %arg6[%c0_14, %c0_15] : memref<32x64xbf16, #tpu.memory_space<vmem>>, vector<32x64xbf16>
    %cst_16 = arith.constant dense<0.000000e+00> : vector<16x64xf32>
    %32 = tpu.matmul %25, %31, %cst_16 {dimension_numbers = #tpu.dot_dimension_numbers<[1], [0], [0], [1], [0, 0, 1, 1], [], []>} : vector<16x32xbf16>, vector<32x64xbf16>, vector<16x64xf32> -> vector<16x64xf32>
    %c0_17 = arith.constant 0 : index
    %c0_18 = arith.constant 0 : index
    %33 = vector.load %arg7[%c0_17, %c0_18] : memref<1x64xf32, #tpu.memory_space<vmem>>, vector<1x64xf32>
    %34 = vector.broadcast %33 : vector<1x64xf32> to vector<16x64xf32>
    %35 = arith.addf %32, %34 : vector<16x64xf32>
    %36 = arith.truncf %30 : vector<16x32xf32> to vector<16x32xbf16>
    %c0_19 = arith.constant 0 : index
    %c0_20 = arith.constant 0 : index
    %37 = vector.load %arg8[%c0_19, %c0_20] : memref<16x32xbf16, #tpu.memory_space<vmem>>, vector<16x32xbf16>
    tpu.vector_store %arg8[%c0_19, %c0_20], %36 {strides = array<i32>} : memref<16x32xbf16, #tpu.memory_space<vmem>>, vector<16x32xbf16>,
    %38 = arith.truncf %35 : vector<16x64xf32> to vector<16x64xbf16>
    %c0_21 = arith.constant 0 : index
    %c0_22 = arith.constant 0 : index
    %39 = vector.load %arg9[%c0_21, %c0_22] : memref<16x64xbf16, #tpu.memory_space<vmem>>, vector<16x64xbf16>
    tpu.vector_store %arg9[%c0_21, %c0_22], %38 {strides = array<i32>} : memref<16x64xbf16, #tpu.memory_space<vmem>>, vector<16x64xbf16>,
    return
  }
  func.func @transform_0(%arg0: i32) -> (i32, i32) {
    %c0_i32 = arith.constant 0 : i32
    %c0_i32_0 = arith.constant 0 : i32
    return %arg0, %c0_i32 : i32, i32
  }
  func.func @transform_1(%arg0: i32) -> (i32, i32) {
    %c0_i32 = arith.constant 0 : i32
    %c0_i32_0 = arith.constant 0 : i32
    %c0_i32_1 = arith.constant 0 : i32
    return %c0_i32, %c0_i32_0 : i32, i32
  }
  func.func @transform_2(%arg0: i32) -> (i32, i32) {
    %c0_i32 = arith.constant 0 : i32
    %c0_i32_0 = arith.constant 0 : i32
    %c0_i32_1 = arith.constant 0 : i32
    return %c0_i32, %c0_i32_0 : i32, i32
  }
  func.func @transform_3(%arg0: i32) -> (i32, i32) {
    %c0_i32 = arith.constant 0 : i32
    %c0_i32_0 = arith.constant 0 : i32
    %c0_i32_1 = arith.constant 0 : i32
    return %c0_i32, %c0_i32_0 : i32, i32
  }
  func.func @transform_4(%arg0: i32) -> (i32, i32) {
    %c0_i32 = arith.constant 0 : i32
    %c0_i32_0 = arith.constant 0 : i32
    %c0_i32_1 = arith.constant 0 : i32
    return %c0_i32, %c0_i32_0 : i32, i32
  }
  func.func @transform_5(%arg0: i32) -> (i32, i32) {
    %c0_i32 = arith.constant 0 : i32
    %c0_i32_0 = arith.constant 0 : i32
    %c0_i32_1 = arith.constant 0 : i32
    return %c0_i32, %c0_i32_0 : i32, i32
  }
  func.func @transform_6(%arg0: i32) -> (i32, i32) {
    %c0_i32 = arith.constant 0 : i32
    %c0_i32_0 = arith.constant 0 : i32
    %c0_i32_1 = arith.constant 0 : i32
    return %c0_i32, %c0_i32_0 : i32, i32
  }
  func.func @transform_7(%arg0: i32) -> (i32, i32) {
    %c0_i32 = arith.constant 0 : i32
    %c0_i32_0 = arith.constant 0 : i32
    return %arg0, %c0_i32 : i32, i32
  }
  func.func @transform_8(%arg0: i32) -> (i32, i32) {
    %c0_i32 = arith.constant 0 : i32
    %c0_i32_0 = arith.constant 0 : i32
    return %arg0, %c0_i32 : i32, i32
  }
}

module attributes {stable_mosaic.version = 11 : i64} {
  func.func @_linear_kernel(%arg0: i32, %arg1: memref<16x32xbf16, #tpu.memory_space<vmem>>, %arg2: memref<32x64xbf16, #tpu.memory_space<vmem>>, %arg3: memref<1x64xf32, #tpu.memory_space<vmem>>, %arg4: memref<16x64xbf16, #tpu.memory_space<vmem>>) attributes {dimension_semantics = [#tpu.dimension_semantics<parallel>], iteration_bounds = array<i64: 1>, scalar_prefetch = 0 : i64, scratch_operands = 0 : i64, tpu.core_type = #tpu.core_type<tc>, window_params = [{transform_indices = @transform_0, window_bounds = array<i64: 16, 32>}, {pipeline_mode = #tpu.pipeline_mode<synchronous>, transform_indices = @transform_1, window_bounds = array<i64: 32, 64>}, {pipeline_mode = #tpu.pipeline_mode<synchronous>, transform_indices = @transform_2, window_bounds = array<i64: 1, 64>}, {transform_indices = @transform_3, window_bounds = array<i64: 16, 64>}]} {
    %c0 = arith.constant 0 : index
    %c0_0 = arith.constant 0 : index
    %0 = vector.load %arg1[%c0, %c0_0] : memref<16x32xbf16, #tpu.memory_space<vmem>>, vector<16x32xbf16>
    %c0_1 = arith.constant 0 : index
    %c0_2 = arith.constant 0 : index
    %1 = vector.load %arg2[%c0_1, %c0_2] : memref<32x64xbf16, #tpu.memory_space<vmem>>, vector<32x64xbf16>
    %cst = arith.constant dense<0.000000e+00> : vector<16x64xf32>
    %2 = tpu.matmul %0, %1, %cst {dimension_numbers = #tpu.dot_dimension_numbers<[1], [0], [0], [1], [0, 0, 1, 1], [], []>} : vector<16x32xbf16>, vector<32x64xbf16>, vector<16x64xf32> -> vector<16x64xf32>
    %c0_3 = arith.constant 0 : index
    %c0_4 = arith.constant 0 : index
    %3 = vector.load %arg3[%c0_3, %c0_4] : memref<1x64xf32, #tpu.memory_space<vmem>>, vector<1x64xf32>
    %4 = vector.broadcast %3 : vector<1x64xf32> to vector<16x64xf32>
    %5 = arith.addf %2, %4 : vector<16x64xf32>
    %6 = arith.truncf %5 : vector<16x64xf32> to vector<16x64xbf16>
    %c0_5 = arith.constant 0 : index
    %c0_6 = arith.constant 0 : index
    %7 = vector.load %arg4[%c0_5, %c0_6] : memref<16x64xbf16, #tpu.memory_space<vmem>>, vector<16x64xbf16>
    tpu.vector_store %arg4[%c0_5, %c0_6], %6 {strides = array<i32>} : memref<16x64xbf16, #tpu.memory_space<vmem>>, vector<16x64xbf16>,
    return
  }
  func.func @transform_0(%arg0: i32) -> (i32, i32) {
    %c0_i32 = arith.constant 0 : i32
    %c0_i32_0 = arith.constant 0 : i32
    return %arg0, %c0_i32 : i32, i32
  }
  func.func @transform_1(%arg0: i32) -> (i32, i32) {
    %c0_i32 = arith.constant 0 : i32
    %c0_i32_0 = arith.constant 0 : i32
    %c0_i32_1 = arith.constant 0 : i32
    return %c0_i32, %c0_i32_0 : i32, i32
  }
  func.func @transform_2(%arg0: i32) -> (i32, i32) {
    %c0_i32 = arith.constant 0 : i32
    %c0_i32_0 = arith.constant 0 : i32
    %c0_i32_1 = arith.constant 0 : i32
    return %c0_i32, %c0_i32_0 : i32, i32
  }
  func.func @transform_3(%arg0: i32) -> (i32, i32) {
    %c0_i32 = arith.constant 0 : i32
    %c0_i32_0 = arith.constant 0 : i32
    return %arg0, %c0_i32 : i32, i32
  }
}

module attributes {stable_mosaic.version = 11 : i64} {
  func.func @_mha_o_residual_kernel(%arg0: i32, %arg1: i32, %arg2: memref<1x8x32xbf16, #tpu.memory_space<vmem>>, %arg3: memref<1x8x64xbf16, #tpu.memory_space<vmem>>, %arg4: memref<1x1x8xi32, #tpu.memory_space<vmem>>, %arg5: memref<32x32xbf16, #tpu.memory_space<vmem>>, %arg6: memref<1x32xf32, #tpu.memory_space<vmem>>, %arg7: memref<1x8x32xbf16, #tpu.memory_space<vmem>>, %arg8: memref<1x8x32xbf16, #tpu.memory_space<vmem>>) attributes {dimension_semantics = [#tpu.dimension_semantics<parallel>, #tpu.dimension_semantics<parallel>], iteration_bounds = array<i64: 2, 1>, scalar_prefetch = 0 : i64, scratch_operands = 0 : i64, tpu.core_type = #tpu.core_type<tc>, window_params = [{transform_indices = @transform_0, window_bounds = array<i64: 1, 8, 32>}, {transform_indices = @transform_1, window_bounds = array<i64: 1, 8, 64>}, {transform_indices = @transform_2, window_bounds = array<i64: 1, 1, 8>}, {pipeline_mode = #tpu.pipeline_mode<synchronous>, transform_indices = @transform_3, window_bounds = array<i64: 32, 32>}, {pipeline_mode = #tpu.pipeline_mode<synchronous>, transform_indices = @transform_4, window_bounds = array<i64: 1, 32>}, {transform_indices = @transform_5, window_bounds = array<i64: 1, 8, 32>}, {transform_indices = @transform_6, window_bounds = array<i64: 1, 8, 32>}]} {
    %c0 = arith.constant 0 : index
    %c0_0 = arith.constant 0 : index
    %c0_1 = arith.constant 0 : index
    %0 = vector.load %arg2[%c0, %c0_0, %c0_1] : memref<1x8x32xbf16, #tpu.memory_space<vmem>>, vector<1x8x32xbf16>
    %1 = vector.shape_cast %0 : vector<1x8x32xbf16> to vector<8x32xbf16>
    %2 = arith.extf %1 : vector<8x32xbf16> to vector<8x32xf32>
    %cst = arith.constant 0.353553385 : f32
    %3 = vector.broadcast %cst : f32 to vector<8x32xf32>
    %4 = arith.mulf %2, %3 : vector<8x32xf32>
    %5 = arith.truncf %4 : vector<8x32xf32> to vector<8x32xbf16>
    %c0_2 = arith.constant 0 : index
    %c0_3 = arith.constant 0 : index
    %c0_4 = arith.constant 0 : index
    %6 = vector.load %arg3[%c0_2, %c0_3, %c0_4] : memref<1x8x64xbf16, #tpu.memory_space<vmem>>, vector<1x8x64xbf16>
    %7 = vector.shape_cast %6 : vector<1x8x64xbf16> to vector<8x64xbf16>
    %8 = vector.extract_strided_slice %7 {offsets = [0, 0], sizes = [8, 32], strides = [1, 1]} : vector<8x64xbf16> to vector<8x32xbf16>
    %9 = vector.extract_strided_slice %7 {offsets = [0, 32], sizes = [8, 32], strides = [1, 1]} : vector<8x64xbf16> to vector<8x32xbf16>
    %c0_5 = arith.constant 0 : index
    %c0_6 = arith.constant 0 : index
    %c0_7 = arith.constant 0 : index
    %10 = vector.load %arg4[%c0_5, %c0_6, %c0_7] : memref<1x1x8xi32, #tpu.memory_space<vmem>>, vector<1x1x8xi32>
    %11 = vector.shape_cast %10 : vector<1x1x8xi32> to vector<1x8xi32>
    %c0_i32 = arith.constant 0 : i32
    %12 = vector.broadcast %c0_i32 : i32 to vector<1x8xi32>
    %13 = arith.cmpi ne, %11, %12 : vector<1x8xi32>
    %c8_i32 = arith.constant 8 : i32
    %14 = arith.muli %arg1, %c8_i32 : i32
    %15 = tpu.iota {dimensions = array<i32: 0>} : vector<8x8xi32>
    %16 = vector.broadcast %14 : i32 to vector<8x8xi32>
    %17 = arith.addi %16, %15 : vector<8x8xi32>
    %18 = tpu.iota {dimensions = array<i32: 1>} : vector<8x8xi32>
    %19 = arith.cmpi sle, %18, %17 : vector<8x8xi32>
    %20 = vector.broadcast %13 : vector<1x8xi1> to vector<8x8xi1>
    %21 = arith.andi %20, %19 : vector<8x8xi1>
    %cst_8 = arith.constant 0.000000e+00 : f32
    %22 = vector.broadcast %cst_8 : f32 to vector<8x32xf32>
    %23 = vector.extract_strided_slice %5 {offsets = [0, 0], sizes = [8, 8], strides = [1, 1]} : vector<8x32xbf16> to vector<8x8xbf16>
    %24 = vector.extract_strided_slice %8 {offsets = [0, 0], sizes = [8, 8], strides = [1, 1]} : vector<8x32xbf16> to vector<8x8xbf16>
    %cst_9 = arith.constant dense<0.000000e+00> : vector<8x8xf32>
    %25 = tpu.matmul %23, %24, %cst_9 {dimension_numbers = #tpu.dot_dimension_numbers<[1], [1], [0], [0], [0, 0, 1, 0], [], []>} : vector<8x8xbf16>, vector<8x8xbf16>, vector<8x8xf32> -> vector<8x8xf32>
    %cst_10 = arith.constant -1.000000e+09 : f32
    %26 = vector.broadcast %cst_10 : f32 to vector<8x8xf32>
    %27 = arith.select %21, %25, %26 : vector<8x8xi1>, vector<8x8xf32>
    %cst_11 = arith.constant dense<0xFF800000> : vector<8xf32>
    %28 = vector.multi_reduction <maximumf>, %27, %cst_11 [1] : vector<8x8xf32> to vector<8xf32>
    %29 = vector.shape_cast %28 : vector<8xf32> to vector<8x1xf32>
    %30 = vector.broadcast %29 : vector<8x1xf32> to vector<8x8xf32>
    %31 = arith.subf %27, %30 : vector<8x8xf32>
    %32 = math.exp %31 : vector<8x8xf32>
    %cst_12 = arith.constant dense<0.000000e+00> : vector<8xf32>
    %33 = vector.multi_reduction <add>, %32, %cst_12 [1] : vector<8x8xf32> to vector<8xf32>
    %34 = vector.shape_cast %33 : vector<8xf32> to vector<8x1xf32>
    %35 = tpu.reciprocal %34 {approx = true} : vector<8x1xf32> -> vector<8x1xf32>
    %36 = arith.truncf %32 : vector<8x8xf32> to vector<8x8xbf16>
    %37 = vector.extract_strided_slice %9 {offsets = [0, 0], sizes = [8, 8], strides = [1, 1]} : vector<8x32xbf16> to vector<8x8xbf16>
    %cst_13 = arith.constant dense<0.000000e+00> : vector<8x8xf32>
    %38 = tpu.matmul %36, %37, %cst_13 {dimension_numbers = #tpu.dot_dimension_numbers<[1], [0], [0], [1], [0, 0, 1, 1], [], []>} : vector<8x8xbf16>, vector<8x8xbf16>, vector<8x8xf32> -> vector<8x8xf32>
    %39 = vector.broadcast %35 : vector<8x1xf32> to vector<8x8xf32>
    %40 = arith.mulf %38, %39 : vector<8x8xf32>
    %41 = arith.truncf %40 : vector<8x8xf32> to vector<8x8xbf16>
    %c0_14 = arith.constant 0 : index
    %c0_15 = arith.constant 0 : index
    %42 = vector.load %arg5[%c0_14, %c0_15] : memref<32x32xbf16, #tpu.memory_space<vmem>>, vector<8x32xbf16>
    %cst_16 = arith.constant dense<0.000000e+00> : vector<8x32xf32>
    %43 = tpu.matmul %41, %42, %cst_16 {dimension_numbers = #tpu.dot_dimension_numbers<[1], [0], [0], [1], [0, 0, 1, 1], [], []>} : vector<8x8xbf16>, vector<8x32xbf16>, vector<8x32xf32> -> vector<8x32xf32>
    %44 = arith.addf %22, %43 : vector<8x32xf32>
    %45 = vector.extract_strided_slice %5 {offsets = [0, 8], sizes = [8, 8], strides = [1, 1]} : vector<8x32xbf16> to vector<8x8xbf16>
    %46 = vector.extract_strided_slice %8 {offsets = [0, 8], sizes = [8, 8], strides = [1, 1]} : vector<8x32xbf16> to vector<8x8xbf16>
    %cst_17 = arith.constant dense<0.000000e+00> : vector<8x8xf32>
    %47 = tpu.matmul %45, %46, %cst_17 {dimension_numbers = #tpu.dot_dimension_numbers<[1], [1], [0], [0], [0, 0, 1, 0], [], []>} : vector<8x8xbf16>, vector<8x8xbf16>, vector<8x8xf32> -> vector<8x8xf32>
    %cst_18 = arith.constant -1.000000e+09 : f32
    %48 = vector.broadcast %cst_18 : f32 to vector<8x8xf32>
    %49 = arith.select %21, %47, %48 : vector<8x8xi1>, vector<8x8xf32>
    %cst_19 = arith.constant dense<0xFF800000> : vector<8xf32>
    %50 = vector.multi_reduction <maximumf>, %49, %cst_19 [1] : vector<8x8xf32> to vector<8xf32>
    %51 = vector.shape_cast %50 : vector<8xf32> to vector<8x1xf32>
    %52 = vector.broadcast %51 : vector<8x1xf32> to vector<8x8xf32>
    %53 = arith.subf %49, %52 : vector<8x8xf32>
    %54 = math.exp %53 : vector<8x8xf32>
    %cst_20 = arith.constant dense<0.000000e+00> : vector<8xf32>
    %55 = vector.multi_reduction <add>, %54, %cst_20 [1] : vector<8x8xf32> to vector<8xf32>
    %56 = vector.shape_cast %55 : vector<8xf32> to vector<8x1xf32>
    %57 = tpu.reciprocal %56 {approx = true} : vector<8x1xf32> -> vector<8x1xf32>
    %58 = arith.truncf %54 : vector<8x8xf32> to vector<8x8xbf16>
    %59 = vector.extract_strided_slice %9 {offsets = [0, 8], sizes = [8, 8], strides = [1, 1]} : vector<8x32xbf16> to vector<8x8xbf16>
    %cst_21 = arith.constant dense<0.000000e+00> : vector<8x8xf32>
    %60 = tpu.matmul %58, %59, %cst_21 {dimension_numbers = #tpu.dot_dimension_numbers<[1], [0], [0], [1], [0, 0, 1, 1], [], []>} : vector<8x8xbf16>, vector<8x8xbf16>, vector<8x8xf32> -> vector<8x8xf32>
    %61 = vector.broadcast %57 : vector<8x1xf32> to vector<8x8xf32>
    %62 = arith.mulf %60, %61 : vector<8x8xf32>
    %63 = arith.truncf %62 : vector<8x8xf32> to vector<8x8xbf16>
    %c8 = arith.constant 8 : index
    %c0_22 = arith.constant 0 : index
    %64 = vector.load %arg5[%c8, %c0_22] : memref<32x32xbf16, #tpu.memory_space<vmem>>, vector<8x32xbf16>
    %cst_23 = arith.constant dense<0.000000e+00> : vector<8x32xf32>
    %65 = tpu.matmul %63, %64, %cst_23 {dimension_numbers = #tpu.dot_dimension_numbers<[1], [0], [0], [1], [0, 0, 1, 1], [], []>} : vector<8x8xbf16>, vector<8x32xbf16>, vector<8x32xf32> -> vector<8x32xf32>
    %66 = arith.addf %44, %65 : vector<8x32xf32>
    %67 = vector.extract_strided_slice %5 {offsets = [0, 16], sizes = [8, 8], strides = [1, 1]} : vector<8x32xbf16> to vector<8x8xbf16>
    %68 = vector.extract_strided_slice %8 {offsets = [0, 16], sizes = [8, 8], strides = [1, 1]} : vector<8x32xbf16> to vector<8x8xbf16>
    %cst_24 = arith.constant dense<0.000000e+00> : vector<8x8xf32>
    %69 = tpu.matmul %67, %68, %cst_24 {dimension_numbers = #tpu.dot_dimension_numbers<[1], [1], [0], [0], [0, 0, 1, 0], [], []>} : vector<8x8xbf16>, vector<8x8xbf16>, vector<8x8xf32> -> vector<8x8xf32>
    %cst_25 = arith.constant -1.000000e+09 : f32
    %70 = vector.broadcast %cst_25 : f32 to vector<8x8xf32>
    %71 = arith.select %21, %69, %70 : vector<8x8xi1>, vector<8x8xf32>
    %cst_26 = arith.constant dense<0xFF800000> : vector<8xf32>
    %72 = vector.multi_reduction <maximumf>, %71, %cst_26 [1] : vector<8x8xf32> to vector<8xf32>
    %73 = vector.shape_cast %72 : vector<8xf32> to vector<8x1xf32>
    %74 = vector.broadcast %73 : vector<8x1xf32> to vector<8x8xf32>
    %75 = arith.subf %71, %74 : vector<8x8xf32>
    %76 = math.exp %75 : vector<8x8xf32>
    %cst_27 = arith.constant dense<0.000000e+00> : vector<8xf32>
    %77 = vector.multi_reduction <add>, %76, %cst_27 [1] : vector<8x8xf32> to vector<8xf32>
    %78 = vector.shape_cast %77 : vector<8xf32> to vector<8x1xf32>
    %79 = tpu.reciprocal %78 {approx = true} : vector<8x1xf32> -> vector<8x1xf32>
    %80 = arith.truncf %76 : vector<8x8xf32> to vector<8x8xbf16>
    %81 = vector.extract_strided_slice %9 {offsets = [0, 16], sizes = [8, 8], strides = [1, 1]} : vector<8x32xbf16> to vector<8x8xbf16>
    %cst_28 = arith.constant dense<0.000000e+00> : vector<8x8xf32>
    %82 = tpu.matmul %80, %81, %cst_28 {dimension_numbers = #tpu.dot_dimension_numbers<[1], [0], [0], [1], [0, 0, 1, 1], [], []>} : vector<8x8xbf16>, vector<8x8xbf16>, vector<8x8xf32> -> vector<8x8xf32>
    %83 = vector.broadcast %79 : vector<8x1xf32> to vector<8x8xf32>
    %84 = arith.mulf %82, %83 : vector<8x8xf32>
    %85 = arith.truncf %84 : vector<8x8xf32> to vector<8x8xbf16>
    %c16 = arith.constant 16 : index
    %c0_29 = arith.constant 0 : index
    %86 = vector.load %arg5[%c16, %c0_29] : memref<32x32xbf16, #tpu.memory_space<vmem>>, vector<8x32xbf16>
    %cst_30 = arith.constant dense<0.000000e+00> : vector<8x32xf32>
    %87 = tpu.matmul %85, %86, %cst_30 {dimension_numbers = #tpu.dot_dimension_numbers<[1], [0], [0], [1], [0, 0, 1, 1], [], []>} : vector<8x8xbf16>, vector<8x32xbf16>, vector<8x32xf32> -> vector<8x32xf32>
    %88 = arith.addf %66, %87 : vector<8x32xf32>
    %89 = vector.extract_strided_slice %5 {offsets = [0, 24], sizes = [8, 8], strides = [1, 1]} : vector<8x32xbf16> to vector<8x8xbf16>
    %90 = vector.extract_strided_slice %8 {offsets = [0, 24], sizes = [8, 8], strides = [1, 1]} : vector<8x32xbf16> to vector<8x8xbf16>
    %cst_31 = arith.constant dense<0.000000e+00> : vector<8x8xf32>
    %91 = tpu.matmul %89, %90, %cst_31 {dimension_numbers = #tpu.dot_dimension_numbers<[1], [1], [0], [0], [0, 0, 1, 0], [], []>} : vector<8x8xbf16>, vector<8x8xbf16>, vector<8x8xf32> -> vector<8x8xf32>
    %cst_32 = arith.constant -1.000000e+09 : f32
    %92 = vector.broadcast %cst_32 : f32 to vector<8x8xf32>
    %93 = arith.select %21, %91, %92 : vector<8x8xi1>, vector<8x8xf32>
    %cst_33 = arith.constant dense<0xFF800000> : vector<8xf32>
    %94 = vector.multi_reduction <maximumf>, %93, %cst_33 [1] : vector<8x8xf32> to vector<8xf32>
    %95 = vector.shape_cast %94 : vector<8xf32> to vector<8x1xf32>
    %96 = vector.broadcast %95 : vector<8x1xf32> to vector<8x8xf32>
    %97 = arith.subf %93, %96 : vector<8x8xf32>
    %98 = math.exp %97 : vector<8x8xf32>
    %cst_34 = arith.constant dense<0.000000e+00> : vector<8xf32>
    %99 = vector.multi_reduction <add>, %98, %cst_34 [1] : vector<8x8xf32> to vector<8xf32>
    %100 = vector.shape_cast %99 : vector<8xf32> to vector<8x1xf32>
    %101 = tpu.reciprocal %100 {approx = true} : vector<8x1xf32> -> vector<8x1xf32>
    %102 = arith.truncf %98 : vector<8x8xf32> to vector<8x8xbf16>
    %103 = vector.extract_strided_slice %9 {offsets = [0, 24], sizes = [8, 8], strides = [1, 1]} : vector<8x32xbf16> to vector<8x8xbf16>
    %cst_35 = arith.constant dense<0.000000e+00> : vector<8x8xf32>
    %104 = tpu.matmul %102, %103, %cst_35 {dimension_numbers = #tpu.dot_dimension_numbers<[1], [0], [0], [1], [0, 0, 1, 1], [], []>} : vector<8x8xbf16>, vector<8x8xbf16>, vector<8x8xf32> -> vector<8x8xf32>
    %105 = vector.broadcast %101 : vector<8x1xf32> to vector<8x8xf32>
    %106 = arith.mulf %104, %105 : vector<8x8xf32>
    %107 = arith.truncf %106 : vector<8x8xf32> to vector<8x8xbf16>
    %c24 = arith.constant 24 : index
    %c0_36 = arith.constant 0 : index
    %108 = vector.load %arg5[%c24, %c0_36] : memref<32x32xbf16, #tpu.memory_space<vmem>>, vector<8x32xbf16>
    %cst_37 = arith.constant dense<0.000000e+00> : vector<8x32xf32>
    %109 = tpu.matmul %107, %108, %cst_37 {dimension_numbers = #tpu.dot_dimension_numbers<[1], [0], [0], [1], [0, 0, 1, 1], [], []>} : vector<8x8xbf16>, vector<8x32xbf16>, vector<8x32xf32> -> vector<8x32xf32>
    %110 = arith.addf %88, %109 : vector<8x32xf32>
    %c0_38 = arith.constant 0 : index
    %c0_39 = arith.constant 0 : index
    %c0_40 = arith.constant 0 : index
    %111 = vector.load %arg7[%c0_38, %c0_39, %c0_40] : memref<1x8x32xbf16, #tpu.memory_space<vmem>>, vector<1x8x32xbf16>
    %112 = vector.shape_cast %111 : vector<1x8x32xbf16> to vector<8x32xbf16>
    %113 = arith.extf %112 : vector<8x32xbf16> to vector<8x32xf32>
    %114 = arith.addf %113, %110 : vector<8x32xf32>
    %c0_41 = arith.constant 0 : index
    %c0_42 = arith.constant 0 : index
    %115 = vector.load %arg6[%c0_41, %c0_42] : memref<1x32xf32, #tpu.memory_space<vmem>>, vector<1x32xf32>
    %116 = vector.broadcast %115 : vector<1x32xf32> to vector<8x32xf32>
    %117 = arith.addf %114, %116 : vector<8x32xf32>
    %118 = arith.truncf %117 : vector<8x32xf32> to vector<8x32xbf16>
    %c0_43 = arith.constant 0 : index
    %c0_44 = arith.constant 0 : index
    %c0_45 = arith.constant 0 : index
    %119 = vector.load %arg8[%c0_43, %c0_44, %c0_45] : memref<1x8x32xbf16, #tpu.memory_space<vmem>>, vector<1x8x32xbf16>
    %120 = vector.shape_cast %119 : vector<1x8x32xbf16> to vector<8x32xbf16>
    %121 = vector.shape_cast %118 : vector<8x32xbf16> to vector<1x8x32xbf16>
    tpu.vector_store %arg8[%c0_43, %c0_44, %c0_45], %121 {strides = array<i32>} : memref<1x8x32xbf16, #tpu.memory_space<vmem>>, vector<1x8x32xbf16>,
    return
  }
  func.func @transform_0(%arg0: i32, %arg1: i32) -> (i32, i32, i32) {
    %c0_i32 = arith.constant 0 : i32
    %c0_i32_0 = arith.constant 0 : i32
    return %arg0, %arg1, %c0_i32 : i32, i32, i32
  }
  func.func @transform_1(%arg0: i32, %arg1: i32) -> (i32, i32, i32) {
    %c0_i32 = arith.constant 0 : i32
    %c0_i32_0 = arith.constant 0 : i32
    %c0_i32_1 = arith.constant 0 : i32
    return %arg0, %c0_i32, %c0_i32_0 : i32, i32, i32
  }
  func.func @transform_2(%arg0: i32, %arg1: i32) -> (i32, i32, i32) {
    %c0_i32 = arith.constant 0 : i32
    %c0_i32_0 = arith.constant 0 : i32
    %c0_i32_1 = arith.constant 0 : i32
    return %arg0, %c0_i32, %c0_i32_0 : i32, i32, i32
  }
  func.func @transform_3(%arg0: i32, %arg1: i32) -> (i32, i32) {
    %c0_i32 = arith.constant 0 : i32
    %c0_i32_0 = arith.constant 0 : i32
    %c0_i32_1 = arith.constant 0 : i32
    return %c0_i32, %c0_i32_0 : i32, i32
  }
  func.func @transform_4(%arg0: i32, %arg1: i32) -> (i32, i32) {
    %c0_i32 = arith.constant 0 : i32
    %c0_i32_0 = arith.constant 0 : i32
    %c0_i32_1 = arith.constant 0 : i32
    return %c0_i32, %c0_i32_0 : i32, i32
  }
  func.func @transform_5(%arg0: i32, %arg1: i32) -> (i32, i32, i32) {
    %c0_i32 = arith.constant 0 : i32
    %c0_i32_0 = arith.constant 0 : i32
    return %arg0, %arg1, %c0_i32 : i32, i32, i32
  }
  func.func @transform_6(%arg0: i32, %arg1: i32) -> (i32, i32, i32) {
    %c0_i32 = arith.constant 0 : i32
    %c0_i32_0 = arith.constant 0 : i32
    return %arg0, %arg1, %c0_i32 : i32, i32, i32
  }
}

module attributes {stable_mosaic.version = 11 : i64} {
  func.func @_ln_linear_kernel(%arg0: i32, %arg1: memref<16x32xbf16, #tpu.memory_space<vmem>>, %arg2: memref<1x32xf32, #tpu.memory_space<vmem>>, %arg3: memref<1x32xf32, #tpu.memory_space<vmem>>, %arg4: memref<32x32xbf16, #tpu.memory_space<vmem>>, %arg5: memref<1x32xf32, #tpu.memory_space<vmem>>, %arg6: memref<16x32xbf16, #tpu.memory_space<vmem>>) attributes {dimension_semantics = [#tpu.dimension_semantics<parallel>], iteration_bounds = array<i64: 1>, scalar_prefetch = 0 : i64, scratch_operands = 0 : i64, tpu.core_type = #tpu.core_type<tc>, window_params = [{transform_indices = @transform_0, window_bounds = array<i64: 16, 32>}, {pipeline_mode = #tpu.pipeline_mode<synchronous>, transform_indices = @transform_1, window_bounds = array<i64: 1, 32>}, {pipeline_mode = #tpu.pipeline_mode<synchronous>, transform_indices = @transform_2, window_bounds = array<i64: 1, 32>}, {pipeline_mode = #tpu.pipeline_mode<synchronous>, transform_indices = @transform_3, window_bounds = array<i64: 32, 32>}, {pipeline_mode = #tpu.pipeline_mode<synchronous>, transform_indices = @transform_4, window_bounds = array<i64: 1, 32>}, {transform_indices = @transform_5, window_bounds = array<i64: 16, 32>}]} {
    %c0 = arith.constant 0 : index
    %c0_0 = arith.constant 0 : index
    %0 = vector.load %arg1[%c0, %c0_0] : memref<16x32xbf16, #tpu.memory_space<vmem>>, vector<16x32xbf16>
    %c0_1 = arith.constant 0 : index
    %c0_2 = arith.constant 0 : index
    %1 = vector.load %arg2[%c0_1, %c0_2] : memref<1x32xf32, #tpu.memory_space<vmem>>, vector<1x32xf32>
    %c0_3 = arith.constant 0 : index
    %c0_4 = arith.constant 0 : index
    %2 = vector.load %arg3[%c0_3, %c0_4] : memref<1x32xf32, #tpu.memory_space<vmem>>, vector<1x32xf32>
    %3 = arith.extf %0 : vector<16x32xbf16> to vector<16x32xf32>
    %cst = arith.constant dense<0.000000e+00> : vector<16xf32>
    %4 = vector.multi_reduction <add>, %3, %cst [1] : vector<16x32xf32> to vector<16xf32>
    %5 = vector.shape_cast %4 : vector<16xf32> to vector<16x1xf32>
    %cst_5 = arith.constant 3.200000e+01 : f32
    %6 = vector.broadcast %cst_5 : f32 to vector<16x1xf32>
    %7 = arith.divf %5, %6 : vector<16x1xf32>
    %8 = vector.broadcast %7 : vector<16x1xf32> to vector<16x32xf32>
    %9 = arith.subf %3, %8 : vector<16x32xf32>
    %10 = arith.mulf %9, %9 : vector<16x32xf32>
    %cst_6 = arith.constant dense<0.000000e+00> : vector<16xf32>
    %11 = vector.multi_reduction <add>, %10, %cst_6 [1] : vector<16x32xf32> to vector<16xf32>
    %12 = vector.shape_cast %11 : vector<16xf32> to vector<16x1xf32>
    %cst_7 = arith.constant 0.0322580636 : f32
    %13 = vector.broadcast %cst_7 : f32 to vector<16x1xf32>
    %14 = arith.mulf %12, %13 : vector<16x1xf32>
    %15 = math.sqrt %14 : vector<16x1xf32>
    %cst_8 = arith.constant 9.99999997E-7 : f32
    %16 = vector.broadcast %cst_8 : f32 to vector<16x1xf32>
    %17 = arith.addf %15, %16 : vector<16x1xf32>
    %18 = tpu.reciprocal %17 {approx = true} : vector<16x1xf32> -> vector<16x1xf32>
    %19 = vector.broadcast %1 : vector<1x32xf32> to vector<16x32xf32>
    %20 = arith.mulf %19, %9 : vector<16x32xf32>
    %21 = vector.broadcast %18 : vector<16x1xf32> to vector<16x32xf32>
    %22 = arith.mulf %20, %21 : vector<16x32xf32>
    %23 = vector.broadcast %2 : vector<1x32xf32> to vector<16x32xf32>
    %24 = arith.addf %22, %23 : vector<16x32xf32>
    %25 = arith.truncf %24 : vector<16x32xf32> to vector<16x32xbf16>
    %c0_9 = arith.constant 0 : index
    %c0_10 = arith.constant 0 : index
    %26 = vector.load %arg4[%c0_9, %c0_10] : memref<32x32xbf16, #tpu.memory_space<vmem>>, vector<32x32xbf16>
    %cst_11 = arith.constant dense<0.000000e+00> : vector<16x32xf32>
    %27 = tpu.matmul %25, %26, %cst_11 {dimension_numbers = #tpu.dot_dimension_numbers<[1], [0], [0], [1], [0, 0, 1, 1], [], []>} : vector<16x32xbf16>, vector<32x32xbf16>, vector<16x32xf32> -> vector<16x32xf32>
    %c0_12 = arith.constant 0 : index
    %c0_13 = arith.constant 0 : index
    %28 = vector.load %arg5[%c0_12, %c0_13] : memref<1x32xf32, #tpu.memory_space<vmem>>, vector<1x32xf32>
    %29 = vector.broadcast %28 : vector<1x32xf32> to vector<16x32xf32>
    %30 = arith.addf %27, %29 : vector<16x32xf32>
    %31 = arith.truncf %30 : vector<16x32xf32> to vector<16x32xbf16>
    %c0_14 = arith.constant 0 : index
    %c0_15 = arith.constant 0 : index
    %32 = vector.load %arg6[%c0_14, %c0_15] : memref<16x32xbf16, #tpu.memory_space<vmem>>, vector<16x32xbf16>
    tpu.vector_store %arg6[%c0_14, %c0_15], %31 {strides = array<i32>} : memref<16x32xbf16, #tpu.memory_space<vmem>>, vector<16x32xbf16>,
    return
  }
  func.func @transform_0(%arg0: i32) -> (i32, i32) {
    %c0_i32 = arith.constant 0 : i32
    %c0_i32_0 = arith.constant 0 : i32
    return %arg0, %c0_i32 : i32, i32
  }
  func.func @transform_1(%arg0: i32) -> (i32, i32) {
    %c0_i32 = arith.constant 0 : i32
    %c0_i32_0 = arith.constant 0 : i32
    %c0_i32_1 = arith.constant 0 : i32
    return %c0_i32, %c0_i32_0 : i32, i32
  }
  func.func @transform_2(%arg0: i32) -> (i32, i32) {
    %c0_i32 = arith.constant 0 : i32
    %c0_i32_0 = arith.constant 0 : i32
    %c0_i32_1 = arith.constant 0 : i32
    return %c0_i32, %c0_i32_0 : i32, i32
  }
  func.func @transform_3(%arg0: i32) -> (i32, i32) {
    %c0_i32 = arith.constant 0 : i32
    %c0_i32_0 = arith.constant 0 : i32
    %c0_i32_1 = arith.constant 0 : i32
    return %c0_i32, %c0_i32_0 : i32, i32
  }
  func.func @transform_4(%arg0: i32) -> (i32, i32) {
    %c0_i32 = arith.constant 0 : i32
    %c0_i32_0 = arith.constant 0 : i32
    %c0_i32_1 = arith.constant 0 : i32
    return %c0_i32, %c0_i32_0 : i32, i32
  }
  func.func @transform_5(%arg0: i32) -> (i32, i32) {
    %c0_i32 = arith.constant 0 : i32
    %c0_i32_0 = arith.constant 0 : i32
    return %arg0, %c0_i32 : i32, i32
  }
}

module attributes {stable_mosaic.version = 11 : i64} {
  func.func @_mha_o_residual_kernel(%arg0: i32, %arg1: i32, %arg2: memref<1x8x32xbf16, #tpu.memory_space<vmem>>, %arg3: memref<1x8x64xbf16, #tpu.memory_space<vmem>>, %arg4: memref<1x1x8xi32, #tpu.memory_space<vmem>>, %arg5: memref<32x32xbf16, #tpu.memory_space<vmem>>, %arg6: memref<1x32xf32, #tpu.memory_space<vmem>>, %arg7: memref<1x8x32xbf16, #tpu.memory_space<vmem>>, %arg8: memref<1x8x32xbf16, #tpu.memory_space<vmem>>) attributes {dimension_semantics = [#tpu.dimension_semantics<parallel>, #tpu.dimension_semantics<parallel>], iteration_bounds = array<i64: 2, 1>, scalar_prefetch = 0 : i64, scratch_operands = 0 : i64, tpu.core_type = #tpu.core_type<tc>, window_params = [{transform_indices = @transform_0, window_bounds = array<i64: 1, 8, 32>}, {transform_indices = @transform_1, window_bounds = array<i64: 1, 8, 64>}, {transform_indices = @transform_2, window_bounds = array<i64: 1, 1, 8>}, {pipeline_mode = #tpu.pipeline_mode<synchronous>, transform_indices = @transform_3, window_bounds = array<i64: 32, 32>}, {pipeline_mode = #tpu.pipeline_mode<synchronous>, transform_indices = @transform_4, window_bounds = array<i64: 1, 32>}, {transform_indices = @transform_5, window_bounds = array<i64: 1, 8, 32>}, {transform_indices = @transform_6, window_bounds = array<i64: 1, 8, 32>}]} {
    %c0 = arith.constant 0 : index
    %c0_0 = arith.constant 0 : index
    %c0_1 = arith.constant 0 : index
    %0 = vector.load %arg2[%c0, %c0_0, %c0_1] : memref<1x8x32xbf16, #tpu.memory_space<vmem>>, vector<1x8x32xbf16>
    %1 = vector.shape_cast %0 : vector<1x8x32xbf16> to vector<8x32xbf16>
    %2 = arith.extf %1 : vector<8x32xbf16> to vector<8x32xf32>
    %cst = arith.constant 0.353553385 : f32
    %3 = vector.broadcast %cst : f32 to vector<8x32xf32>
    %4 = arith.mulf %2, %3 : vector<8x32xf32>
    %5 = arith.truncf %4 : vector<8x32xf32> to vector<8x32xbf16>
    %c0_2 = arith.constant 0 : index
    %c0_3 = arith.constant 0 : index
    %c0_4 = arith.constant 0 : index
    %6 = vector.load %arg3[%c0_2, %c0_3, %c0_4] : memref<1x8x64xbf16, #tpu.memory_space<vmem>>, vector<1x8x64xbf16>
    %7 = vector.shape_cast %6 : vector<1x8x64xbf16> to vector<8x64xbf16>
    %8 = vector.extract_strided_slice %7 {offsets = [0, 0], sizes = [8, 32], strides = [1, 1]} : vector<8x64xbf16> to vector<8x32xbf16>
    %9 = vector.extract_strided_slice %7 {offsets = [0, 32], sizes = [8, 32], strides = [1, 1]} : vector<8x64xbf16> to vector<8x32xbf16>
    %c0_5 = arith.constant 0 : index
    %c0_6 = arith.constant 0 : index
    %c0_7 = arith.constant 0 : index
    %10 = vector.load %arg4[%c0_5, %c0_6, %c0_7] : memref<1x1x8xi32, #tpu.memory_space<vmem>>, vector<1x1x8xi32>
    %11 = vector.shape_cast %10 : vector<1x1x8xi32> to vector<1x8xi32>
    %c0_i32 = arith.constant 0 : i32
    %12 = vector.broadcast %c0_i32 : i32 to vector<1x8xi32>
    %13 = arith.cmpi ne, %11, %12 : vector<1x8xi32>
    %cst_8 = arith.constant 0.000000e+00 : f32
    %14 = vector.broadcast %cst_8 : f32 to vector<8x32xf32>
    %15 = vector.extract_strided_slice %5 {offsets = [0, 0], sizes = [8, 8], strides = [1, 1]} : vector<8x32xbf16> to vector<8x8xbf16>
    %16 = vector.extract_strided_slice %8 {offsets = [0, 0], sizes = [8, 8], strides = [1, 1]} : vector<8x32xbf16> to vector<8x8xbf16>
    %cst_9 = arith.constant dense<0.000000e+00> : vector<8x8xf32>
    %17 = tpu.matmul %15, %16, %cst_9 {dimension_numbers = #tpu.dot_dimension_numbers<[1], [1], [0], [0], [0, 0, 1, 0], [], []>} : vector<8x8xbf16>, vector<8x8xbf16>, vector<8x8xf32> -> vector<8x8xf32>
    %cst_10 = arith.constant -1.000000e+09 : f32
    %18 = vector.shape_cast %13 : vector<1x8xi1> to vector<1x8xi1>
    %19 = vector.broadcast %18 : vector<1x8xi1> to vector<8x8xi1>
    %20 = vector.broadcast %cst_10 : f32 to vector<8x8xf32>
    %21 = arith.select %19, %17, %20 : vector<8x8xi1>, vector<8x8xf32>
    %cst_11 = arith.constant dense<0xFF800000> : vector<8xf32>
    %22 = vector.multi_reduction <maximumf>, %21, %cst_11 [1] : vector<8x8xf32> to vector<8xf32>
    %23 = vector.shape_cast %22 : vector<8xf32> to vector<8x1xf32>
    %24 = vector.broadcast %23 : vector<8x1xf32> to vector<8x8xf32>
    %25 = arith.subf %21, %24 : vector<8x8xf32>
    %26 = math.exp %25 : vector<8x8xf32>
    %cst_12 = arith.constant dense<0.000000e+00> : vector<8xf32>
    %27 = vector.multi_reduction <add>, %26, %cst_12 [1] : vector<8x8xf32> to vector<8xf32>
    %28 = vector.shape_cast %27 : vector<8xf32> to vector<8x1xf32>
    %29 = tpu.reciprocal %28 {approx = true} : vector<8x1xf32> -> vector<8x1xf32>
    %30 = arith.truncf %26 : vector<8x8xf32> to vector<8x8xbf16>
    %31 = vector.extract_strided_slice %9 {offsets = [0, 0], sizes = [8, 8], strides = [1, 1]} : vector<8x32xbf16> to vector<8x8xbf16>
    %cst_13 = arith.constant dense<0.000000e+00> : vector<8x8xf32>
    %32 = tpu.matmul %30, %31, %cst_13 {dimension_numbers = #tpu.dot_dimension_numbers<[1], [0], [0], [1], [0, 0, 1, 1], [], []>} : vector<8x8xbf16>, vector<8x8xbf16>, vector<8x8xf32> -> vector<8x8xf32>
    %33 = vector.broadcast %29 : vector<8x1xf32> to vector<8x8xf32>
    %34 = arith.mulf %32, %33 : vector<8x8xf32>
    %35 = arith.truncf %34 : vector<8x8xf32> to vector<8x8xbf16>
    %c0_14 = arith.constant 0 : index
    %c0_15 = arith.constant 0 : index
    %36 = vector.load %arg5[%c0_14, %c0_15] : memref<32x32xbf16, #tpu.memory_space<vmem>>, vector<8x32xbf16>
    %cst_16 = arith.constant dense<0.000000e+00> : vector<8x32xf32>
    %37 = tpu.matmul %35, %36, %cst_16 {dimension_numbers = #tpu.dot_dimension_numbers<[1], [0], [0], [1], [0, 0, 1, 1], [], []>} : vector<8x8xbf16>, vector<8x32xbf16>, vector<8x32xf32> -> vector<8x32xf32>
    %38 = arith.addf %14, %37 : vector<8x32xf32>
    %39 = vector.extract_strided_slice %5 {offsets = [0, 8], sizes = [8, 8], strides = [1, 1]} : vector<8x32xbf16> to vector<8x8xbf16>
    %40 = vector.extract_strided_slice %8 {offsets = [0, 8], sizes = [8, 8], strides = [1, 1]} : vector<8x32xbf16> to vector<8x8xbf16>
    %cst_17 = arith.constant dense<0.000000e+00> : vector<8x8xf32>
    %41 = tpu.matmul %39, %40, %cst_17 {dimension_numbers = #tpu.dot_dimension_numbers<[1], [1], [0], [0], [0, 0, 1, 0], [], []>} : vector<8x8xbf16>, vector<8x8xbf16>, vector<8x8xf32> -> vector<8x8xf32>
    %cst_18 = arith.constant -1.000000e+09 : f32
    %42 = vector.shape_cast %13 : vector<1x8xi1> to vector<1x8xi1>
    %43 = vector.broadcast %42 : vector<1x8xi1> to vector<8x8xi1>
    %44 = vector.broadcast %cst_18 : f32 to vector<8x8xf32>
    %45 = arith.select %43, %41, %44 : vector<8x8xi1>, vector<8x8xf32>
    %cst_19 = arith.constant dense<0xFF800000> : vector<8xf32>
    %46 = vector.multi_reduction <maximumf>, %45, %cst_19 [1] : vector<8x8xf32> to vector<8xf32>
    %47 = vector.shape_cast %46 : vector<8xf32> to vector<8x1xf32>
    %48 = vector.broadcast %47 : vector<8x1xf32> to vector<8x8xf32>
    %49 = arith.subf %45, %48 : vector<8x8xf32>
    %50 = math.exp %49 : vector<8x8xf32>
    %cst_20 = arith.constant dense<0.000000e+00> : vector<8xf32>
    %51 = vector.multi_reduction <add>, %50, %cst_20 [1] : vector<8x8xf32> to vector<8xf32>
    %52 = vector.shape_cast %51 : vector<8xf32> to vector<8x1xf32>
    %53 = tpu.reciprocal %52 {approx = true} : vector<8x1xf32> -> vector<8x1xf32>
    %54 = arith.truncf %50 : vector<8x8xf32> to vector<8x8xbf16>
    %55 = vector.extract_strided_slice %9 {offsets = [0, 8], sizes = [8, 8], strides = [1, 1]} : vector<8x32xbf16> to vector<8x8xbf16>
    %cst_21 = arith.constant dense<0.000000e+00> : vector<8x8xf32>
    %56 = tpu.matmul %54, %55, %cst_21 {dimension_numbers = #tpu.dot_dimension_numbers<[1], [0], [0], [1], [0, 0, 1, 1], [], []>} : vector<8x8xbf16>, vector<8x8xbf16>, vector<8x8xf32> -> vector<8x8xf32>
    %57 = vector.broadcast %53 : vector<8x1xf32> to vector<8x8xf32>
    %58 = arith.mulf %56, %57 : vector<8x8xf32>
    %59 = arith.truncf %58 : vector<8x8xf32> to vector<8x8xbf16>
    %c8 = arith.constant 8 : index
    %c0_22 = arith.constant 0 : index
    %60 = vector.load %arg5[%c8, %c0_22] : memref<32x32xbf16, #tpu.memory_space<vmem>>, vector<8x32xbf16>
    %cst_23 = arith.constant dense<0.000000e+00> : vector<8x32xf32>
    %61 = tpu.matmul %59, %60, %cst_23 {dimension_numbers = #tpu.dot_dimension_numbers<[1], [0], [0], [1], [0, 0, 1, 1], [], []>} : vector<8x8xbf16>, vector<8x32xbf16>, vector<8x32xf32> -> vector<8x32xf32>
    %62 = arith.addf %38, %61 : vector<8x32xf32>
    %63 = vector.extract_strided_slice %5 {offsets = [0, 16], sizes = [8, 8], strides = [1, 1]} : vector<8x32xbf16> to vector<8x8xbf16>
    %64 = vector.extract_strided_slice %8 {offsets = [0, 16], sizes = [8, 8], strides = [1, 1]} : vector<8x32xbf16> to vector<8x8xbf16>
    %cst_24 = arith.constant dense<0.000000e+00> : vector<8x8xf32>
    %65 = tpu.matmul %63, %64, %cst_24 {dimension_numbers = #tpu.dot_dimension_numbers<[1], [1], [0], [0], [0, 0, 1, 0], [], []>} : vector<8x8xbf16>, vector<8x8xbf16>, vector<8x8xf32> -> vector<8x8xf32>
    %cst_25 = arith.constant -1.000000e+09 : f32
    %66 = vector.shape_cast %13 : vector<1x8xi1> to vector<1x8xi1>
    %67 = vector.broadcast %66 : vector<1x8xi1> to vector<8x8xi1>
    %68 = vector.broadcast %cst_25 : f32 to vector<8x8xf32>
    %69 = arith.select %67, %65, %68 : vector<8x8xi1>, vector<8x8xf32>
    %cst_26 = arith.constant dense<0xFF800000> : vector<8xf32>
    %70 = vector.multi_reduction <maximumf>, %69, %cst_26 [1] : vector<8x8xf32> to vector<8xf32>
    %71 = vector.shape_cast %70 : vector<8xf32> to vector<8x1xf32>
    %72 = vector.broadcast %71 : vector<8x1xf32> to vector<8x8xf32>
    %73 = arith.subf %69, %72 : vector<8x8xf32>
    %74 = math.exp %73 : vector<8x8xf32>
    %cst_27 = arith.constant dense<0.000000e+00> : vector<8xf32>
    %75 = vector.multi_reduction <add>, %74, %cst_27 [1] : vector<8x8xf32> to vector<8xf32>
    %76 = vector.shape_cast %75 : vector<8xf32> to vector<8x1xf32>
    %77 = tpu.reciprocal %76 {approx = true} : vector<8x1xf32> -> vector<8x1xf32>
    %78 = arith.truncf %74 : vector<8x8xf32> to vector<8x8xbf16>
    %79 = vector.extract_strided_slice %9 {offsets = [0, 16], sizes = [8, 8], strides = [1, 1]} : vector<8x32xbf16> to vector<8x8xbf16>
    %cst_28 = arith.constant dense<0.000000e+00> : vector<8x8xf32>
    %80 = tpu.matmul %78, %79, %cst_28 {dimension_numbers = #tpu.dot_dimension_numbers<[1], [0], [0], [1], [0, 0, 1, 1], [], []>} : vector<8x8xbf16>, vector<8x8xbf16>, vector<8x8xf32> -> vector<8x8xf32>
    %81 = vector.broadcast %77 : vector<8x1xf32> to vector<8x8xf32>
    %82 = arith.mulf %80, %81 : vector<8x8xf32>
    %83 = arith.truncf %82 : vector<8x8xf32> to vector<8x8xbf16>
    %c16 = arith.constant 16 : index
    %c0_29 = arith.constant 0 : index
    %84 = vector.load %arg5[%c16, %c0_29] : memref<32x32xbf16, #tpu.memory_space<vmem>>, vector<8x32xbf16>
    %cst_30 = arith.constant dense<0.000000e+00> : vector<8x32xf32>
    %85 = tpu.matmul %83, %84, %cst_30 {dimension_numbers = #tpu.dot_dimension_numbers<[1], [0], [0], [1], [0, 0, 1, 1], [], []>} : vector<8x8xbf16>, vector<8x32xbf16>, vector<8x32xf32> -> vector<8x32xf32>
    %86 = arith.addf %62, %85 : vector<8x32xf32>
    %87 = vector.extract_strided_slice %5 {offsets = [0, 24], sizes = [8, 8], strides = [1, 1]} : vector<8x32xbf16> to vector<8x8xbf16>
    %88 = vector.extract_strided_slice %8 {offsets = [0, 24], sizes = [8, 8], strides = [1, 1]} : vector<8x32xbf16> to vector<8x8xbf16>
    %cst_31 = arith.constant dense<0.000000e+00> : vector<8x8xf32>
    %89 = tpu.matmul %87, %88, %cst_31 {dimension_numbers = #tpu.dot_dimension_numbers<[1], [1], [0], [0], [0, 0, 1, 0], [], []>} : vector<8x8xbf16>, vector<8x8xbf16>, vector<8x8xf32> -> vector<8x8xf32>
    %cst_32 = arith.constant -1.000000e+09 : f32
    %90 = vector.shape_cast %13 : vector<1x8xi1> to vector<1x8xi1>
    %91 = vector.broadcast %90 : vector<1x8xi1> to vector<8x8xi1>
    %92 = vector.broadcast %cst_32 : f32 to vector<8x8xf32>
    %93 = arith.select %91, %89, %92 : vector<8x8xi1>, vector<8x8xf32>
    %cst_33 = arith.constant dense<0xFF800000> : vector<8xf32>
    %94 = vector.multi_reduction <maximumf>, %93, %cst_33 [1] : vector<8x8xf32> to vector<8xf32>
    %95 = vector.shape_cast %94 : vector<8xf32> to vector<8x1xf32>
    %96 = vector.broadcast %95 : vector<8x1xf32> to vector<8x8xf32>
    %97 = arith.subf %93, %96 : vector<8x8xf32>
    %98 = math.exp %97 : vector<8x8xf32>
    %cst_34 = arith.constant dense<0.000000e+00> : vector<8xf32>
    %99 = vector.multi_reduction <add>, %98, %cst_34 [1] : vector<8x8xf32> to vector<8xf32>
    %100 = vector.shape_cast %99 : vector<8xf32> to vector<8x1xf32>
    %101 = tpu.reciprocal %100 {approx = true} : vector<8x1xf32> -> vector<8x1xf32>
    %102 = arith.truncf %98 : vector<8x8xf32> to vector<8x8xbf16>
    %103 = vector.extract_strided_slice %9 {offsets = [0, 24], sizes = [8, 8], strides = [1, 1]} : vector<8x32xbf16> to vector<8x8xbf16>
    %cst_35 = arith.constant dense<0.000000e+00> : vector<8x8xf32>
    %104 = tpu.matmul %102, %103, %cst_35 {dimension_numbers = #tpu.dot_dimension_numbers<[1], [0], [0], [1], [0, 0, 1, 1], [], []>} : vector<8x8xbf16>, vector<8x8xbf16>, vector<8x8xf32> -> vector<8x8xf32>
    %105 = vector.broadcast %101 : vector<8x1xf32> to vector<8x8xf32>
    %106 = arith.mulf %104, %105 : vector<8x8xf32>
    %107 = arith.truncf %106 : vector<8x8xf32> to vector<8x8xbf16>
    %c24 = arith.constant 24 : index
    %c0_36 = arith.constant 0 : index
    %108 = vector.load %arg5[%c24, %c0_36] : memref<32x32xbf16, #tpu.memory_space<vmem>>, vector<8x32xbf16>
    %cst_37 = arith.constant dense<0.000000e+00> : vector<8x32xf32>
    %109 = tpu.matmul %107, %108, %cst_37 {dimension_numbers = #tpu.dot_dimension_numbers<[1], [0], [0], [1], [0, 0, 1, 1], [], []>} : vector<8x8xbf16>, vector<8x32xbf16>, vector<8x32xf32> -> vector<8x32xf32>
    %110 = arith.addf %86, %109 : vector<8x32xf32>
    %c0_38 = arith.constant 0 : index
    %c0_39 = arith.constant 0 : index
    %c0_40 = arith.constant 0 : index
    %111 = vector.load %arg7[%c0_38, %c0_39, %c0_40] : memref<1x8x32xbf16, #tpu.memory_space<vmem>>, vector<1x8x32xbf16>
    %112 = vector.shape_cast %111 : vector<1x8x32xbf16> to vector<8x32xbf16>
    %113 = arith.extf %112 : vector<8x32xbf16> to vector<8x32xf32>
    %114 = arith.addf %113, %110 : vector<8x32xf32>
    %c0_41 = arith.constant 0 : index
    %c0_42 = arith.constant 0 : index
    %115 = vector.load %arg6[%c0_41, %c0_42] : memref<1x32xf32, #tpu.memory_space<vmem>>, vector<1x32xf32>
    %116 = vector.broadcast %115 : vector<1x32xf32> to vector<8x32xf32>
    %117 = arith.addf %114, %116 : vector<8x32xf32>
    %118 = arith.truncf %117 : vector<8x32xf32> to vector<8x32xbf16>
    %c0_43 = arith.constant 0 : index
    %c0_44 = arith.constant 0 : index
    %c0_45 = arith.constant 0 : index
    %119 = vector.load %arg8[%c0_43, %c0_44, %c0_45] : memref<1x8x32xbf16, #tpu.memory_space<vmem>>, vector<1x8x32xbf16>
    %120 = vector.shape_cast %119 : vector<1x8x32xbf16> to vector<8x32xbf16>
    %121 = vector.shape_cast %118 : vector<8x32xbf16> to vector<1x8x32xbf16>
    tpu.vector_store %arg8[%c0_43, %c0_44, %c0_45], %121 {strides = array<i32>} : memref<1x8x32xbf16, #tpu.memory_space<vmem>>, vector<1x8x32xbf16>,
    return
  }
  func.func @transform_0(%arg0: i32, %arg1: i32) -> (i32, i32, i32) {
    %c0_i32 = arith.constant 0 : i32
    %c0_i32_0 = arith.constant 0 : i32
    return %arg0, %arg1, %c0_i32 : i32, i32, i32
  }
  func.func @transform_1(%arg0: i32, %arg1: i32) -> (i32, i32, i32) {
    %c0_i32 = arith.constant 0 : i32
    %c0_i32_0 = arith.constant 0 : i32
    %c0_i32_1 = arith.constant 0 : i32
    return %arg0, %c0_i32, %c0_i32_0 : i32, i32, i32
  }
  func.func @transform_2(%arg0: i32, %arg1: i32) -> (i32, i32, i32) {
    %c0_i32 = arith.constant 0 : i32
    %c0_i32_0 = arith.constant 0 : i32
    %c0_i32_1 = arith.constant 0 : i32
    return %arg0, %c0_i32, %c0_i32_0 : i32, i32, i32
  }
  func.func @transform_3(%arg0: i32, %arg1: i32) -> (i32, i32) {
    %c0_i32 = arith.constant 0 : i32
    %c0_i32_0 = arith.constant 0 : i32
    %c0_i32_1 = arith.constant 0 : i32
    return %c0_i32, %c0_i32_0 : i32, i32
  }
  func.func @transform_4(%arg0: i32, %arg1: i32) -> (i32, i32) {
    %c0_i32 = arith.constant 0 : i32
    %c0_i32_0 = arith.constant 0 : i32
    %c0_i32_1 = arith.constant 0 : i32
    return %c0_i32, %c0_i32_0 : i32, i32
  }
  func.func @transform_5(%arg0: i32, %arg1: i32) -> (i32, i32, i32) {
    %c0_i32 = arith.constant 0 : i32
    %c0_i32_0 = arith.constant 0 : i32
    return %arg0, %arg1, %c0_i32 : i32, i32, i32
  }
  func.func @transform_6(%arg0: i32, %arg1: i32) -> (i32, i32, i32) {
    %c0_i32 = arith.constant 0 : i32
    %c0_i32_0 = arith.constant 0 : i32
    return %arg0, %arg1, %c0_i32 : i32, i32, i32
  }
}

module attributes {stable_mosaic.version = 11 : i64} {
  func.func @_ln_ffn_residual_kernel(%arg0: i32, %arg1: i32, %arg2: memref<16x32xbf16, #tpu.memory_space<vmem>>, %arg3: memref<1x32xf32, #tpu.memory_space<vmem>>, %arg4: memref<1x32xf32, #tpu.memory_space<vmem>>, %arg5: memref<32x64xbf16, #tpu.memory_space<vmem>>, %arg6: memref<1x64xf32, #tpu.memory_space<vmem>>, %arg7: memref<64x32xbf16, #tpu.memory_space<vmem>>, %arg8: memref<1x32xf32, #tpu.memory_space<vmem>>, %arg9: memref<16x32xbf16, #tpu.memory_space<vmem>>, %arg10: memref<16x32xbf16, #tpu.memory_space<vmem>>, %arg11: memref<16x32xf32, #tpu.memory_space<vmem>>) attributes {dimension_semantics = [#tpu.dimension_semantics<parallel>, #tpu.dimension_semantics<arbitrary>], iteration_bounds = array<i64: 1, 1>, scalar_prefetch = 0 : i64, scratch_operands = 2 : i64, tpu.core_type = #tpu.core_type<tc>, window_params = [{transform_indices = @transform_0, window_bounds = array<i64: 16, 32>}, {pipeline_mode = #tpu.pipeline_mode<synchronous>, transform_indices = @transform_1, window_bounds = array<i64: 1, 32>}, {pipeline_mode = #tpu.pipeline_mode<synchronous>, transform_indices = @transform_2, window_bounds = array<i64: 1, 32>}, {transform_indices = @transform_3, window_bounds = array<i64: 32, 64>}, {transform_indices = @transform_4, window_bounds = array<i64: 1, 64>}, {transform_indices = @transform_5, window_bounds = array<i64: 64, 32>}, {pipeline_mode = #tpu.pipeline_mode<synchronous>, transform_indices = @transform_6, window_bounds = array<i64: 1, 32>}, {transform_indices = @transform_7, window_bounds = array<i64: 16, 32>}]} {
    %c0_i32 = arith.constant 0 : i32
    %0 = arith.cmpi eq, %arg1, %c0_i32 : i32
    %1 = arith.extui %0 : i1 to i32
    %c0_i32_0 = arith.constant 0 : i32
    %2 = arith.cmpi ne, %1, %c0_i32_0 : i32
    scf.if %2 {
      %c0_16 = arith.constant 0 : index
      %c0_17 = arith.constant 0 : index
      %20 = vector.load %arg2[%c0_16, %c0_17] : memref<16x32xbf16, #tpu.memory_space<vmem>>, vector<16x32xbf16>
      %c0_18 = arith.constant 0 : index
      %c0_19 = arith.constant 0 : index
      %21 = vector.load %arg3[%c0_18, %c0_19] : memref<1x32xf32, #tpu.memory_space<vmem>>, vector<1x32xf32>
      %c0_20 = arith.constant 0 : index
      %c0_21 = arith.constant 0 : index
      %22 = vector.load %arg4[%c0_20, %c0_21] : memref<1x32xf32, #tpu.memory_space<vmem>>, vector<1x32xf32>
      %23 = arith.extf %20 : vector<16x32xbf16> to vector<16x32xf32>
      %cst_22 = arith.constant dense<0.000000e+00> : vector<16xf32>
      %24 = vector.multi_reduction <add>, %23, %cst_22 [1] : vector<16x32xf32> to vector<16xf32>
      %25 = vector.shape_cast %24 : vector<16xf32> to vector<16x1xf32>
      %cst_23 = arith.constant 3.200000e+01 : f32
      %26 = vector.broadcast %cst_23 : f32 to vector<16x1xf32>
      %27 = arith.divf %25, %26 : vector<16x1xf32>
      %28 = vector.broadcast %27 : vector<16x1xf32> to vector<16x32xf32>
      %29 = arith.subf %23, %28 : vector<16x32xf32>
      %30 = arith.mulf %29, %29 : vector<16x32xf32>
      %cst_24 = arith.constant dense<0.000000e+00> : vector<16xf32>
      %31 = vector.multi_reduction <add>, %30, %cst_24 [1] : vector<16x32xf32> to vector<16xf32>
      %32 = vector.shape_cast %31 : vector<16xf32> to vector<16x1xf32>
      %cst_25 = arith.constant 0.0322580636 : f32
      %33 = vector.broadcast %cst_25 : f32 to vector<16x1xf32>
      %34 = arith.mulf %32, %33 : vector<16x1xf32>
      %35 = math.sqrt %34 : vector<16x1xf32>
      %cst_26 = arith.constant 9.99999997E-7 : f32
      %36 = vector.broadcast %cst_26 : f32 to vector<16x1xf32>
      %37 = arith.addf %35, %36 : vector<16x1xf32>
      %38 = tpu.reciprocal %37 {approx = true} : vector<16x1xf32> -> vector<16x1xf32>
      %39 = vector.broadcast %21 : vector<1x32xf32> to vector<16x32xf32>
      %40 = arith.mulf %39, %29 : vector<16x32xf32>
      %41 = vector.broadcast %38 : vector<16x1xf32> to vector<16x32xf32>
      %42 = arith.mulf %40, %41 : vector<16x32xf32>
      %43 = vector.broadcast %22 : vector<1x32xf32> to vector<16x32xf32>
      %44 = arith.addf %42, %43 : vector<16x32xf32>
      %45 = arith.truncf %44 : vector<16x32xf32> to vector<16x32xbf16>
      %c0_27 = arith.constant 0 : index
      %c0_28 = arith.constant 0 : index
      %46 = vector.load %arg10[%c0_27, %c0_28] : memref<16x32xbf16, #tpu.memory_space<vmem>>, vector<16x32xbf16>
      tpu.vector_store %arg10[%c0_27, %c0_28], %45 {strides = array<i32>} : memref<16x32xbf16, #tpu.memory_space<vmem>>, vector<16x32xbf16>,
      %cst_29 = arith.constant 0.000000e+00 : f32
      %47 = vector.broadcast %cst_29 : f32 to vector<16x32xf32>
      %c0_30 = arith.constant 0 : index
      %c0_31 = arith.constant 0 : index
      %48 = vector.load %arg11[%c0_30, %c0_31] : memref<16x32xf32, #tpu.memory_space<vmem>>, vector<16x32xf32>
      tpu.vector_store %arg11[%c0_30, %c0_31], %47 {strides = array<i32>} : memref<16x32xf32, #tpu.memory_space<vmem>>, vector<16x32xf32>,
    } else {
    }
    %c0 = arith.constant 0 : index
    %c0_1 = arith.constant 0 : index
    %3 = vector.load %arg10[%c0, %c0_1] : memref<16x32xbf16, #tpu.memory_space<vmem>>, vector<16x32xbf16>
    %c0_2 = arith.constant 0 : index
    %c0_3 = arith.constant 0 : index
    %4 = vector.load %arg5[%c0_2, %c0_3] : memref<32x64xbf16, #tpu.memory_space<vmem>>, vector<32x64xbf16>
    %cst = arith.constant dense<0.000000e+00> : vector<16x64xf32>
    %5 = tpu.matmul %3, %4, %cst {dimension_numbers = #tpu.dot_dimension_numbers<[1], [0], [0], [1], [0, 0, 1, 1], [], []>} : vector<16x32xbf16>, vector<32x64xbf16>, vector<16x64xf32> -> vector<16x64xf32>
    %c0_4 = arith.constant 0 : index
    %c0_5 = arith.constant 0 : index
    %6 = vector.load %arg6[%c0_4, %c0_5] : memref<1x64xf32, #tpu.memory_space<vmem>>, vector<1x64xf32>
    %7 = vector.broadcast %6 : vector<1x64xf32> to vector<16x64xf32>
    %8 = arith.addf %5, %7 : vector<16x64xf32>
    %cst_6 = arith.constant 0.000000e+00 : f32
    %9 = vector.broadcast %cst_6 : f32 to vector<16x64xf32>
    %10 = arith.maximumf %8, %9 : vector<16x64xf32>
    %11 = arith.truncf %10 : vector<16x64xf32> to vector<16x64xbf16>
    %c0_7 = arith.constant 0 : index
    %c0_8 = arith.constant 0 : index
    %12 = vector.load %arg11[%c0_7, %c0_8] : memref<16x32xf32, #tpu.memory_space<vmem>>, vector<16x32xf32>
    %c0_9 = arith.constant 0 : index
    %c0_10 = arith.constant 0 : index
    %13 = vector.load %arg7[%c0_9, %c0_10] : memref<64x32xbf16, #tpu.memory_space<vmem>>, vector<64x32xbf16>
    %cst_11 = arith.constant dense<0.000000e+00> : vector<16x32xf32>
    %14 = tpu.matmul %11, %13, %cst_11 {dimension_numbers = #tpu.dot_dimension_numbers<[1], [0], [0], [1], [0, 0, 1, 1], [], []>} : vector<16x64xbf16>, vector<64x32xbf16>, vector<16x32xf32> -> vector<16x32xf32>
    %15 = arith.addf %12, %14 : vector<16x32xf32>
    %c0_12 = arith.constant 0 : index
    %c0_13 = arith.constant 0 : index
    %16 = vector.load %arg11[%c0_12, %c0_13] : memref<16x32xf32, #tpu.memory_space<vmem>>, vector<16x32xf32>
    tpu.vector_store %arg11[%c0_12, %c0_13], %15 {strides = array<i32>} : memref<16x32xf32, #tpu.memory_space<vmem>>, vector<16x32xf32>,
    %c0_i32_14 = arith.constant 0 : i32
    %17 = arith.cmpi eq, %arg1, %c0_i32_14 : i32
    %18 = arith.extui %17 : i1 to i32
    %c0_i32_15 = arith.constant 0 : i32
    %19 = arith.cmpi ne, %18, %c0_i32_15 : i32
    scf.if %19 {
      %c0_16 = arith.constant 0 : index
      %c0_17 = arith.constant 0 : index
      %20 = vector.load %arg2[%c0_16, %c0_17] : memref<16x32xbf16, #tpu.memory_space<vmem>>, vector<16x32xbf16>
      %21 = arith.extf %20 : vector<16x32xbf16> to vector<16x32xf32>
      %c0_18 = arith.constant 0 : index
      %c0_19 = arith.constant 0 : index
      %22 = vector.load %arg11[%c0_18, %c0_19] : memref<16x32xf32, #tpu.memory_space<vmem>>, vector<16x32xf32>
      %23 = arith.addf %21, %22 : vector<16x32xf32>
      %c0_20 = arith.constant 0 : index
      %c0_21 = arith.constant 0 : index
      %24 = vector.load %arg8[%c0_20, %c0_21] : memref<1x32xf32, #tpu.memory_space<vmem>>, vector<1x32xf32>
      %25 = vector.broadcast %24 : vector<1x32xf32> to vector<16x32xf32>
      %26 = arith.addf %23, %25 : vector<16x32xf32>
      %27 = arith.truncf %26 : vector<16x32xf32> to vector<16x32xbf16>
      %c0_22 = arith.constant 0 : index
      %c0_23 = arith.constant 0 : index
      %28 = vector.load %arg9[%c0_22, %c0_23] : memref<16x32xbf16, #tpu.memory_space<vmem>>, vector<16x32xbf16>
      tpu.vector_store %arg9[%c0_22, %c0_23], %27 {strides = array<i32>} : memref<16x32xbf16, #tpu.memory_space<vmem>>, vector<16x32xbf16>,
    } else {
    }
    return
  }
  func.func @transform_0(%arg0: i32, %arg1: i32) -> (i32, i32) {
    %c0_i32 = arith.constant 0 : i32
    %c0_i32_0 = arith.constant 0 : i32
    return %arg0, %c0_i32 : i32, i32
  }
  func.func @transform_1(%arg0: i32, %arg1: i32) -> (i32, i32) {
    %c0_i32 = arith.constant 0 : i32
    %c0_i32_0 = arith.constant 0 : i32
    %c0_i32_1 = arith.constant 0 : i32
    return %c0_i32, %c0_i32_0 : i32, i32
  }
  func.func @transform_2(%arg0: i32, %arg1: i32) -> (i32, i32) {
    %c0_i32 = arith.constant 0 : i32
    %c0_i32_0 = arith.constant 0 : i32
    %c0_i32_1 = arith.constant 0 : i32
    return %c0_i32, %c0_i32_0 : i32, i32
  }
  func.func @transform_3(%arg0: i32, %arg1: i32) -> (i32, i32) {
    %c0_i32 = arith.constant 0 : i32
    %c0_i32_0 = arith.constant 0 : i32
    return %c0_i32, %arg1 : i32, i32
  }
  func.func @transform_4(%arg0: i32, %arg1: i32) -> (i32, i32) {
    %c0_i32 = arith.constant 0 : i32
    %c0_i32_0 = arith.constant 0 : i32
    return %c0_i32, %arg1 : i32, i32
  }
  func.func @transform_5(%arg0: i32, %arg1: i32) -> (i32, i32) {
    %c0_i32 = arith.constant 0 : i32
    %c0_i32_0 = arith.constant 0 : i32
    return %arg1, %c0_i32 : i32, i32
  }
  func.func @transform_6(%arg0: i32, %arg1: i32) -> (i32, i32) {
    %c0_i32 = arith.constant 0 : i32
    %c0_i32_0 = arith.constant 0 : i32
    %c0_i32_1 = arith.constant 0 : i32
    return %c0_i32, %c0_i32_0 : i32, i32
  }
  func.func @transform_7(%arg0: i32, %arg1: i32) -> (i32, i32) {
    %c0_i32 = arith.constant 0 : i32
    %c0_i32_0 = arith.constant 0 : i32
    return %arg0, %c0_i32 : i32, i32
  }
}

module attributes {stable_mosaic.version = 11 : i64} {
  func.func @_layernorm_kernel(%arg0: i32, %arg1: memref<16x32xbf16, #tpu.memory_space<vmem>>, %arg2: memref<1x32xf32, #tpu.memory_space<vmem>>, %arg3: memref<1x32xf32, #tpu.memory_space<vmem>>, %arg4: memref<16x32xf32, #tpu.memory_space<vmem>>) attributes {dimension_semantics = [#tpu.dimension_semantics<parallel>], iteration_bounds = array<i64: 1>, scalar_prefetch = 0 : i64, scratch_operands = 0 : i64, tpu.core_type = #tpu.core_type<tc>, window_params = [{transform_indices = @transform_0, window_bounds = array<i64: 16, 32>}, {pipeline_mode = #tpu.pipeline_mode<synchronous>, transform_indices = @transform_1, window_bounds = array<i64: 1, 32>}, {pipeline_mode = #tpu.pipeline_mode<synchronous>, transform_indices = @transform_2, window_bounds = array<i64: 1, 32>}, {transform_indices = @transform_3, window_bounds = array<i64: 16, 32>}]} {
    %c0 = arith.constant 0 : index
    %c0_0 = arith.constant 0 : index
    %0 = vector.load %arg1[%c0, %c0_0] : memref<16x32xbf16, #tpu.memory_space<vmem>>, vector<16x32xbf16>
    %c0_1 = arith.constant 0 : index
    %c0_2 = arith.constant 0 : index
    %1 = vector.load %arg2[%c0_1, %c0_2] : memref<1x32xf32, #tpu.memory_space<vmem>>, vector<1x32xf32>
    %c0_3 = arith.constant 0 : index
    %c0_4 = arith.constant 0 : index
    %2 = vector.load %arg3[%c0_3, %c0_4] : memref<1x32xf32, #tpu.memory_space<vmem>>, vector<1x32xf32>
    %3 = arith.extf %0 : vector<16x32xbf16> to vector<16x32xf32>
    %cst = arith.constant dense<0.000000e+00> : vector<16xf32>
    %4 = vector.multi_reduction <add>, %3, %cst [1] : vector<16x32xf32> to vector<16xf32>
    %5 = vector.shape_cast %4 : vector<16xf32> to vector<16x1xf32>
    %cst_5 = arith.constant 3.200000e+01 : f32
    %6 = vector.broadcast %cst_5 : f32 to vector<16x1xf32>
    %7 = arith.divf %5, %6 : vector<16x1xf32>
    %8 = vector.broadcast %7 : vector<16x1xf32> to vector<16x32xf32>
    %9 = arith.subf %3, %8 : vector<16x32xf32>
    %10 = arith.mulf %9, %9 : vector<16x32xf32>
    %cst_6 = arith.constant dense<0.000000e+00> : vector<16xf32>
    %11 = vector.multi_reduction <add>, %10, %cst_6 [1] : vector<16x32xf32> to vector<16xf32>
    %12 = vector.shape_cast %11 : vector<16xf32> to vector<16x1xf32>
    %cst_7 = arith.constant 0.0322580636 : f32
    %13 = vector.broadcast %cst_7 : f32 to vector<16x1xf32>
    %14 = arith.mulf %12, %13 : vector<16x1xf32>
    %15 = math.sqrt %14 : vector<16x1xf32>
    %cst_8 = arith.constant 9.99999997E-7 : f32
    %16 = vector.broadcast %cst_8 : f32 to vector<16x1xf32>
    %17 = arith.addf %15, %16 : vector<16x1xf32>
    %18 = tpu.reciprocal %17 {approx = true} : vector<16x1xf32> -> vector<16x1xf32>
    %19 = vector.broadcast %1 : vector<1x32xf32> to vector<16x32xf32>
    %20 = arith.mulf %19, %9 : vector<16x32xf32>
    %21 = vector.broadcast %18 : vector<16x1xf32> to vector<16x32xf32>
    %22 = arith.mulf %20, %21 : vector<16x32xf32>
    %23 = vector.broadcast %2 : vector<1x32xf32> to vector<16x32xf32>
    %24 = arith.addf %22, %23 : vector<16x32xf32>
    %c0_9 = arith.constant 0 : index
    %c0_10 = arith.constant 0 : index
    %25 = vector.load %arg4[%c0_9, %c0_10] : memref<16x32xf32, #tpu.memory_space<vmem>>, vector<16x32xf32>
    tpu.vector_store %arg4[%c0_9, %c0_10], %24 {strides = array<i32>} : memref<16x32xf32, #tpu.memory_space<vmem>>, vector<16x32xf32>,
    return
  }
  func.func @transform_0(%arg0: i32) -> (i32, i32) {
    %c0_i32 = arith.constant 0 : i32
    %c0_i32_0 = arith.constant 0 : i32
    return %arg0, %c0_i32 : i32, i32
  }
  func.func @transform_1(%arg0: i32) -> (i32, i32) {
    %c0_i32 = arith.constant 0 : i32
    %c0_i32_0 = arith.constant 0 : i32
    %c0_i32_1 = arith.constant 0 : i32
    return %c0_i32, %c0_i32_0 : i32, i32
  }
  func.func @transform_2(%arg0: i32) -> (i32, i32) {
    %c0_i32 = arith.constant 0 : i32
    %c0_i32_0 = arith.constant 0 : i32
    %c0_i32_1 = arith.constant 0 : i32
    return %c0_i32, %c0_i32_0 : i32, i32
  }
  func.func @transform_3(%arg0: i32) -> (i32, i32) {
    %c0_i32 = arith.constant 0 : i32
    %c0_i32_0 = arith.constant 0 : i32
    return %arg0, %c0_i32 : i32, i32
  }
}

</mosaic_0001>

<bundles_post_ra>
// kernel: decoder_forward.13
= control target key start
LH: loop header
LB: loop body
LE: loop exit
PB: predicated region body
PF: predicated region fallthrough
CT: control target
= control target key end

     0   :  { %vm35_vm0 = vcmask 261120   ;;  %v313_v15 = vmov 0.0   ;;  %vm314_vm1 = vmmov 0   ;;  %vm233_vm6 = vcmask 257024   ;;  %s405_s0 = inlined_call_operand.vmem [shape: bf16[16,32], index: 0, kind: input, shape index: {}]   ;;  %s406_s3 = inlined_call_operand.vmem [shape: bf16[32,32], index: 3, kind: input, shape index: {}]   ;;  %s407_s5 = inlined_call_operand.vmem [shape: bf16[32,64], index: 5, kind: input, shape index: {}]   ;;  %s408_s1 = inlined_call_operand.vmem [shape: f32[1,32], index: 1, kind: input, shape index: {}]   ;;  %s409_s2 = inlined_call_operand.vmem [shape: f32[1,32], index: 2, kind: input, shape index: {}]   ;;  %s410_s4 = inlined_call_operand.vmem [shape: f32[1,32], index: 4, kind: input, shape index: {}]   ;;  %s411_s6 = inlined_call_operand.vmem [shape: f32[1,64], index: 6, kind: input, shape index: {}]   ;;  %s412_s7 = inlined_call_operand.vmem [shape: bf16[16,32], index: 7, kind: output, shape index: {0}]   ;;  %s413_s8 = inlined_call_operand.vmem [shape: bf16[16,64], index: 8, kind: output, shape index: {1}]  }
   0x1   :  { %v274_v0 = vld [vmem:[%s405_s0] sm:$0xff]   ;;  %283 = vmatprep.subr.bf16.mxu0 %v313_v15  ;;  %291 = vmatprep.subr.bf16.mxu1 %v313_v15  ;;  %v303_v18 = vld [vmem:[%s406_s3 + $0x8] sm:$0xff]   ;;  %vm244_vm7 = vcmask 519168  }
   0x2   :  { %v275_v1 = vunpack.c.l.bf16 %v274_v0  ;;  %v276_v2 = vunpack.c.h.bf16 %v274_v0  ;;  %v301_v16 = vld [vmem:[%s406_s3] sm:$0xff]   ;;  %287 = vmatprep.mubr.msk.bf16.mxu0 %vm314_vm1, %v313_v15  ;;  %295 = vmatprep.mubr.msk.bf16.mxu1 %vm314_vm1, %v313_v15  ;;  %v304_v19 = vld [vmem:[%s407_s5 + $0x8] sm:$0xff]  }
   0x3   :  { %v302_v17 = vld [vmem:[%s407_s5] sm:$0xff]   ;;  %284 = vmatpush3.bf16.msra.mxu0 %v301_v16 }
   0x4   :  { %v36_v3 = vsel %vm35_vm0, %v275_v1, 0.0  ;;  %v39_v4 = vsel %vm35_vm0, %v276_v2, 0.0  ;;  %292 = vmatpush3.bf16.msra.mxu1 %v302_v17  ;;  %285 = vmatprep.subr.bf16.mxu0 %v313_v15  ;;  %v255_v36 = vld [vmem:[%s408_s1] ss:$0 sm:$0xff] }
   0x5   :  { %37 = vadd.xlane.f32.xlu0 %v36_v3  ;;  %293 = vmatprep.subr.bf16.mxu1 %v313_v15  ;;  %v256_v42 = vld [vmem:[%s409_s2] ss:$0 sm:$0xff] }
   0x6   :  { %v257_v47 = vld [vmem:[%s410_s4] ss:$0 sm:$0xff] }
   0x7   :  { %286 = vmatpush3.bf16.msra.mxu0 %v303_v18  ;;  %v261_v48 = vld [vmem:[%s411_s6] ss:$0 sm:$0xff] }
   0x8   :  { %294 = vmatpush3.bf16.msra.mxu1 %v304_v19 }
   0x9   :  { %40 = vadd.xlane.f32.xlu0 %v39_v4 }
  0x92   :  { %v38_v5 = vpop.xlane.xlu0 %37 }
  0x93   :  { %v43_v6 = vmul.f32 0.03125, %v38_v5 }
  0x95   :  { %v45_v7 = vsub.f32 %v275_v1, %v43_v6 }
  0x96   :  { %v41_v8 = vpop.xlane.xlu0 %40 }
  0x97   :  { %v44_v9 = vmul.f32 0.03125, %v41_v8  ;;  %v47_v10 = vmul.f32 %v45_v7, %v45_v7  ;;  %v81_v38 = vmul.f32 %v255_v36, %v45_v7 }
  0x99   :  { %v46_v11 = vsub.f32 %v276_v2, %v44_v9  ;;  %v49_v12 = vsel %vm35_vm0, %v47_v10, 0.0 }
  0x9a   :  { %50 = vadd.xlane.f32.xlu1 %v49_v12 }
  0x9b   :  { %v48_v13 = vmul.f32 %v46_v11, %v46_v11  ;;  %v82_v39 = vmul.f32 %v255_v36, %v46_v11 }
  0x9d   :  { %v52_v14 = vsel %vm35_vm0, %v48_v13, 0.0 }
  0x9e   :  { %53 = vadd.xlane.f32.xlu1 %v52_v14 }
 0x127   :  { %v51_v20 = vpop.xlane.xlu1 %50 }
 0x128   :  { %v55_v21 = vmul.f32 0.032258064, %v51_v20 }
 0x12a   :  { %305 = vrsqrt.f32 %v55_v21  ;;  %vm59_vm2 = vcmp.eq.f32.partialorder %v55_v21, inf  ;;  %v62_v26 = vand.u32 2147483648, %v55_v21  ;;  %vm61_vm3 = vcmp.eq.f32.partialorder %v55_v21, 0.0 }
 0x12b   :  { %v54_v22 = vpop.xlane.xlu1 %53 }
 0x12c   :  { %v56_v23 = vmul.f32 0.032258064, %v54_v22 }
 0x12e   :  { %307 = vrsqrt.f32 %v56_v23  ;;  %vm66_vm4 = vcmp.eq.f32.partialorder %v56_v23, inf  ;;  %v69_v32 = vand.u32 2147483648, %v56_v23  ;;  %vm68_vm5 = vcmp.eq.f32.partialorder %v56_v23, 0.0 }
 0x134   :  { %v306_v24 = vpop.eup %305 }
 0x135   :  { %v58_v25 = vmul.f32 %v306_v24, %v55_v21 }
 0x137   :  { %v60_v27 = vsel %vm59_vm2, %v55_v21, %v58_v25 }
 0x138   :  { %v308_v28 = vpop.eup %307  ;;  %v63_v29 = vsel %vm61_vm3, %v62_v26, %v60_v27 }
 0x139   :  { %v71_v30 = vadd.f32 1e-06, %v63_v29  ;;  %v65_v31 = vmul.f32 %v308_v28, %v56_v23 }
 0x13b   :  { %309 = vrcp.f32 %v71_v30  ;;  %v67_v33 = vsel %vm66_vm4, %v56_v23, %v65_v31 }
 0x13c   :  { %v70_v34 = vsel %vm68_vm5, %v69_v32, %v67_v33 }
 0x13d   :  { %v72_v35 = vadd.f32 1e-06, %v70_v34 }
 0x13f   :  { %311 = vrcp.f32 %v72_v35 }
 0x145   :  { %v310_v37 = vpop.eup %309 }
 0x146   :  { %v83_v40 = vmul.f32 %v310_v37, %v81_v38 }
 0x148   :  { %v91_v44 = vadd.f32 %v256_v42, %v83_v40 }
 0x149   :  { %v312_v41 = vpop.eup %311 }
 0x14a   :  { %v84_v43 = vmul.f32 %v312_v41, %v82_v39 }
 0x14c   :  { %v92_v45 = vadd.f32 %v256_v42, %v84_v43 }
 0x14e   :  { %v93_v46 = vpack.c.bf16 %v92_v45, %v91_v44 }
 0x150   :  { %288 = vmatmul.mubr.msk.bf16.vlgmr.msra.gmra.mrb[0].mxu0 %vm35_vm0, %v93_v46  ;;  %296 = vmatmul.mubr.msk.bf16.vlgmr.msra.gmra.mrb[0].mxu1 %vm35_vm0, %v93_v46 }
 0x223   :  { %v154_v49 = vpop.f32.mrb[0].mxu0  ;;  %v218_v50 = vpop.f32.mrb[0].mxu1 }
 0x224   :  { %v155_v51 = vadd.f32 %v257_v47, %v154_v49  ;;  %v219_v52 = vadd.f32 %v261_v48, %v218_v50  ;;  %v289_v53 = vpop.f32.mrb[1].mxu0  ;;  %v297_v54 = vpop.f32.mrb[1].mxu1 }
 0x225   :  { %v157_v55 = vpop.f32.mrb[2].mxu0  ;;  %v221_v56 = vpop.f32.mrb[2].mxu1 }
 0x226   :  { %v269_v57 = vpack.c.bf16 %v155_v51, %v155_v51  ;;  %v271_v58 = vpack.c.bf16 %v219_v52, %v219_v52  ;;  %v158_v59 = vadd.f32 %v257_v47, %v157_v55  ;;  %v222_v60 = vadd.f32 %v261_v48, %v221_v56  ;;  %v290_v61 = vpop.f32.mrb[3].mxu0  ;;  %v298_v62 = vpop.f32.mrb[3].mxu1 }
 0x228   :  { %234 = vst.msk [vmem:[%s412_s7] sm:$0xf] %vm233_vm6, %v269_v57  ;;  %v270_v63 = vpack.c.bf16 %v158_v59, %v158_v59  ;;  %v272_v0 = vpack.c.bf16 %v222_v60, %v222_v60 }
 0x229   :  { %245 = vst.msk [vmem:[%s413_s8] sm:$0xf] %vm244_vm7, %v271_v58 }
 0x22a   :  { %235 = vst.msk [vmem:[%s412_s7 + $0x4] sm:$0xf] %vm233_vm6, %v270_v63 }
 0x22b   :  { %246 = vst.msk [vmem:[%s413_s8 + $0x4] sm:$0xf] %vm244_vm7, %v272_v0 }

// kernel: decoder_forward.22
= control target key start
LH: loop header
LB: loop body
LE: loop exit
PB: predicated region body
PF: predicated region fallthrough
CT: control target
= control target key end

     0   :  { %v130_v0 = vmov 0.0   ;;  %vm131_vm0 = vmmov 0   ;;  %vm45_vm1 = vcmask 261120   ;;  %vm98_vm2 = vcmask 519168   ;;  %s170_s1 = inlined_call_operand.vmem [shape: bf16[32,64], index: 1, kind: input, shape index: {}]   ;;  %s171_s0 = inlined_call_operand.vmem [shape: bf16[16,32], index: 0, kind: input, shape index: {}]   ;;  %s172_s2 = inlined_call_operand.vmem [shape: f32[1,64], index: 2, kind: input, shape index: {}]   ;;  %s173_s3 = inlined_call_operand.vmem [shape: bf16[16,64], index: 3, kind: output, shape index: {}]  }
   0x1   :  { %117 = vmatprep.subr.bf16.mxu0 %v130_v0  ;;  %v127_v1 = vld [vmem:[%s170_s1] sm:$0xff]   ;;  %121 = vmatprep.mubr.msk.bf16.mxu0 %vm131_vm0, %v130_v0  ;;  %v128_v2 = vld [vmem:[%s170_s1 + $0x8] sm:$0xff]  }
   0x2   :  { %118 = vmatpush3.bf16.msra.mxu0 %v127_v1  ;;  %v129_v3 = vld [vmem:[%s171_s0] sm:$0xff]  }
   0x3   :  { %119 = vmatprep.subr.bf16.mxu0 %v130_v0  ;;  %v105_v4 = vld [vmem:[%s172_s2] ss:$0 sm:$0xff] }
   0x6   :  { %120 = vmatpush3.bf16.msra.mxu0 %v128_v2 }
   0x9   :  { %122 = vmatmul.mubr.msk.bf16.vlgmr.msra.gmra.mrb[0].mxu0 %vm45_vm1, %v129_v3 }
  0xdc   :  { %v83_v5 = vpop.f32.mrb[0].mxu0 }
  0xdd   :  { %v84_v6 = vadd.f32 %v105_v4, %v83_v5  ;;  %v123_v7 = vpop.f32.mrb[1].mxu0 }
  0xde   :  { %v86_v8 = vpop.f32.mrb[2].mxu0 }
  0xdf   :  { %v112_v9 = vpack.c.bf16 %v84_v6, %v84_v6  ;;  %v87_v10 = vadd.f32 %v105_v4, %v86_v8  ;;  %v124_v11 = vpop.f32.mrb[3].mxu0 }
  0xe1   :  { %99 = vst.msk [vmem:[%s173_s3] sm:$0xf] %vm98_vm2, %v112_v9  ;;  %v113_v12 = vpack.c.bf16 %v87_v10, %v87_v10 }
  0xe3   :  { %100 = vst.msk [vmem:[%s173_s3 + $0x4] sm:$0xf] %vm98_vm2, %v113_v12 }

// kernel: decoder_forward.15
= control target key start
LH: loop header
LB: loop body
LE: loop exit
PB: predicated region body
PF: predicated region fallthrough
CT: control target
= control target key end

     0   :  { %vm27_vm0 = vcmask 261120   ;;  %v205_v15 = vmov 0.0   ;;  %vm206_vm1 = vmmov 0   ;;  %vm161_vm6 = vcmask 257024   ;;  %s266_s0 = inlined_call_operand.vmem [shape: bf16[16,32], index: 0, kind: input, shape index: {}]   ;;  %s267_s3 = inlined_call_operand.vmem [shape: bf16[32,32], index: 3, kind: input, shape index: {}]   ;;  %s268_s1 = inlined_call_operand.vmem [shape: f32[1,32], index: 1, kind: input, shape index: {}]   ;;  %s269_s2 = inlined_call_operand.vmem [shape: f32[1,32], index: 2, kind: input, shape index: {}]   ;;  %s270_s4 = inlined_call_operand.vmem [shape: f32[1,32], index: 4, kind: input, shape index: {}]   ;;  %s271_s5 = inlined_call_operand.vmem [shape: bf16[16,32], index: 5, kind: output, shape index: {}]  }
   0x1   :  { %v179_v0 = vld [vmem:[%s266_s0] sm:$0xff]   ;;  %185 = vmatprep.subr.bf16.mxu0 %v205_v15  ;;  %189 = vmatprep.mubr.msk.bf16.mxu0 %vm206_vm1, %v205_v15  ;;  %v196_v17 = vld [vmem:[%s267_s3 + $0x8] sm:$0xff]  }
   0x2   :  { %v180_v1 = vunpack.c.l.bf16 %v179_v0  ;;  %v181_v2 = vunpack.c.h.bf16 %v179_v0  ;;  %v195_v16 = vld [vmem:[%s267_s3] sm:$0xff]  }
   0x3   :  { %186 = vmatpush3.bf16.msra.mxu0 %v195_v16  ;;  %v168_v34 = vld [vmem:[%s268_s1] ss:$0 sm:$0xff] }
   0x4   :  { %v28_v3 = vsel %vm27_vm0, %v180_v1, 0.0  ;;  %v31_v4 = vsel %vm27_vm0, %v181_v2, 0.0  ;;  %187 = vmatprep.subr.bf16.mxu0 %v205_v15  ;;  %v169_v40 = vld [vmem:[%s269_s2] ss:$0 sm:$0xff] }
   0x5   :  { %29 = vadd.xlane.f32.xlu0 %v28_v3  ;;  %v170_v45 = vld [vmem:[%s270_s4] ss:$0 sm:$0xff] }
   0x7   :  { %188 = vmatpush3.bf16.msra.mxu0 %v196_v17 }
   0x9   :  { %32 = vadd.xlane.f32.xlu0 %v31_v4 }
  0x92   :  { %v30_v5 = vpop.xlane.xlu0 %29 }
  0x93   :  { %v35_v6 = vmul.f32 0.03125, %v30_v5 }
  0x95   :  { %v37_v7 = vsub.f32 %v180_v1, %v35_v6 }
  0x96   :  { %v33_v8 = vpop.xlane.xlu0 %32 }
  0x97   :  { %v36_v9 = vmul.f32 0.03125, %v33_v8  ;;  %v39_v10 = vmul.f32 %v37_v7, %v37_v7  ;;  %v73_v36 = vmul.f32 %v168_v34, %v37_v7 }
  0x99   :  { %v38_v11 = vsub.f32 %v181_v2, %v36_v9  ;;  %v41_v12 = vsel %vm27_vm0, %v39_v10, 0.0 }
  0x9a   :  { %42 = vadd.xlane.f32.xlu1 %v41_v12 }
  0x9b   :  { %v40_v13 = vmul.f32 %v38_v11, %v38_v11  ;;  %v74_v37 = vmul.f32 %v168_v34, %v38_v11 }
  0x9d   :  { %v44_v14 = vsel %vm27_vm0, %v40_v13, 0.0 }
  0x9e   :  { %45 = vadd.xlane.f32.xlu1 %v44_v14 }
 0x127   :  { %v43_v18 = vpop.xlane.xlu1 %42 }
 0x128   :  { %v47_v19 = vmul.f32 0.032258064, %v43_v18 }
 0x12a   :  { %197 = vrsqrt.f32 %v47_v19  ;;  %vm51_vm2 = vcmp.eq.f32.partialorder %v47_v19, inf  ;;  %v54_v24 = vand.u32 2147483648, %v47_v19  ;;  %vm53_vm3 = vcmp.eq.f32.partialorder %v47_v19, 0.0 }
 0x12b   :  { %v46_v20 = vpop.xlane.xlu1 %45 }
 0x12c   :  { %v48_v21 = vmul.f32 0.032258064, %v46_v20 }
 0x12e   :  { %199 = vrsqrt.f32 %v48_v21  ;;  %vm58_vm4 = vcmp.eq.f32.partialorder %v48_v21, inf  ;;  %v61_v30 = vand.u32 2147483648, %v48_v21  ;;  %vm60_vm5 = vcmp.eq.f32.partialorder %v48_v21, 0.0 }
 0x134   :  { %v198_v22 = vpop.eup %197 }
 0x135   :  { %v50_v23 = vmul.f32 %v198_v22, %v47_v19 }
 0x137   :  { %v52_v25 = vsel %vm51_vm2, %v47_v19, %v50_v23 }
 0x138   :  { %v200_v26 = vpop.eup %199  ;;  %v55_v27 = vsel %vm53_vm3, %v54_v24, %v52_v25 }
 0x139   :  { %v63_v28 = vadd.f32 1e-06, %v55_v27  ;;  %v57_v29 = vmul.f32 %v200_v26, %v48_v21 }
 0x13b   :  { %201 = vrcp.f32 %v63_v28  ;;  %v59_v31 = vsel %vm58_vm4, %v48_v21, %v57_v29 }
 0x13c   :  { %v62_v32 = vsel %vm60_vm5, %v61_v30, %v59_v31 }
 0x13d   :  { %v64_v33 = vadd.f32 1e-06, %v62_v32 }
 0x13f   :  { %203 = vrcp.f32 %v64_v33 }
 0x145   :  { %v202_v35 = vpop.eup %201 }
 0x146   :  { %v75_v38 = vmul.f32 %v202_v35, %v73_v36 }
 0x148   :  { %v83_v42 = vadd.f32 %v169_v40, %v75_v38 }
 0x149   :  { %v204_v39 = vpop.eup %203 }
 0x14a   :  { %v76_v41 = vmul.f32 %v204_v39, %v74_v37 }
 0x14c   :  { %v84_v43 = vadd.f32 %v169_v40, %v76_v41 }
 0x14e   :  { %v85_v44 = vpack.c.bf16 %v84_v43, %v83_v42 }
 0x150   :  { %190 = vmatmul.mubr.msk.bf16.vlgmr.msra.gmra.mrb[0].mxu0 %vm27_vm0, %v85_v44 }
 0x223   :  { %v146_v46 = vpop.f32.mrb[0].mxu0 }
 0x224   :  { %v147_v47 = vadd.f32 %v170_v45, %v146_v46  ;;  %v191_v48 = vpop.f32.mrb[1].mxu0 }
 0x225   :  { %v149_v49 = vpop.f32.mrb[2].mxu0 }
 0x226   :  { %v176_v50 = vpack.c.bf16 %v147_v47, %v147_v47  ;;  %v150_v51 = vadd.f32 %v170_v45, %v149_v49  ;;  %v192_v52 = vpop.f32.mrb[3].mxu0 }
 0x228   :  { %162 = vst.msk [vmem:[%s271_s5] sm:$0xf] %vm161_vm6, %v176_v50  ;;  %v177_v53 = vpack.c.bf16 %v150_v51, %v150_v51 }
 0x22a   :  { %163 = vst.msk [vmem:[%s271_s5 + $0x4] sm:$0xf] %vm161_vm6, %v177_v53 }

// kernel: decoder_forward.14
= control target key start
LH: loop header
LB: loop body
LE: loop exit
PB: predicated region body
PF: predicated region fallthrough
CT: control target
= control target key end

     0   :  { %s1365_s21 = smov 0   ;;  %s1367_s22 = smov 0   ;;  %s1526_s0 = inlined_call_operand.vmem [shape: bf16[2,8,32], index: 0, kind: input, shape index: {}]   ;;  %s1527_s1 = inlined_call_operand.vmem [shape: bf16[2,8,64], index: 1, kind: input, shape index: {}]   ;;  %s1528_s2 = inlined_call_operand.vmem [shape: s32[2,1,8], index: 2, kind: input, shape index: {}]   ;;  %s1529_s3 = inlined_call_operand.vmem [shape: bf16[32,32], index: 3, kind: input, shape index: {}]   ;;  %s1530_s4 = inlined_call_operand.vmem [shape: f32[1,32], index: 4, kind: input, shape index: {}]   ;;  %s1531_s5 = inlined_call_operand.vmem [shape: bf16[2,8,32], index: 5, kind: input, shape index: {}]   ;;  %s1532_s6 = inlined_call_operand.vmem [shape: bf16[2,8,32], index: 6, kind: output, shape index: {}]  }
   0x1   :  { %s1369_s23 = smov 0  }
   0x2 LB: > { %s28_s24 = sadd.s32 1, %s1314_s22  ;;  %p1128_p0 = scmp.ge.s32.totalorder %s1318_s23, 1  ;;  %s1318_s23 = sphi %s1369_s23, %s16_s23   ;;  %s1314_s22 = sphi %s1367_s22, %s1536_s22   ;;  %s1310_s21 = sphi %s1365_s21, %s1535_s21  }
   0x3   : > { %p30_p1 = scmp.ge.s32.totalorder %s28_s24, 2  ;;  %p261_p2 = scmp.lt.s32.totalorder %s1318_s23, 3 }
   0x5   : > { %s1538_s24 = smov (%p30_p1, %s28_s24), 0  ;;  %p262_p3 = pnand %p1128_p0, %p261_p2 }
   0x6   : > { %p309_p4 = scmp.lt.s32.totalorder (!%p262_p3), %s1310_s21, 1  ;;  %v1320_v0 = vmov (!%p262_p3), 0.0   ;;  %vm1321_vm0 = vmmov (!%p262_p3), 0   ;;  %vm360_vm1 = vcmask (!%p262_p3), 64512   ;;  %s1322_s8 = smov (!%p262_p3), 120   ;;  %v346_v8 = vlaneseq (!%p262_p3) }
   0x7   : > { %265 = sbr.rel (%p262_p3) target bundleno = 2195 (0x893), region = 44  ;;  %1173 = vmatprep.subr.bf16.mxu0 (!%p262_p3), %v1320_v0  ;;  %1175 = vmatprep.mubr.msk.bf16.mxu0 (!%p262_p3), %vm1321_vm0, %v1320_v0  ;;  %v1323_v12 = vmov (!%p262_p3), 0   ;;  %s1324_s12 = smov (!%p262_p3), 96   ;;  %vm427_vm6 = vcmask (!%p262_p3), 1043456   ;;  %v473_v49 = vld [vmem:[%s1529_s3] sm:$0xf] (!%p262_p3) }
   0x8   : > { %1179 = vmatprep.subr.bf16.mxu1 (!%p262_p3), %v1320_v0  ;;  %1181 = vmatprep.mubr.msk.bf16.mxu1 (!%p262_p3), %vm1321_vm0, %v1320_v0  ;;  %v347_v10 = vshrl.u32 (!%p262_p3), %v346_v8, 7  ;;  %v351_v14 = vand.u32 (!%p262_p3), 127, %v346_v8  ;;  %s1325_s13 = smov (!%p262_p3), 88   ;;  %s1326_s14 = smov (!%p262_p3), 112   ;;  %v638_v53 = vsel (!%p262_p3), %vm427_vm6, %v473_v49, 0  ;;  %vm1012_vm7 = vcmask (!%p262_p3), 257024  }
   0x9   : > { %v587_v54 = vld [vmem:[%s1529_s3 + $0x4] sm:$0xf] (!%p262_p3)  ;;  %s1327_s19 = smov (!%p262_p3), 80   ;;  %s1328_s20 = smov (!%p262_p3), 104   ;;  %v952_v16 = vld [vmem:[%s1529_s3 + $0xc] sm:$0xf] (!%p262_p3) }
   0xa   : > { %v356_v11 = vsub.s32 (!%p262_p3), 0, %v347_v10  ;;  %vm352_vm3 = vcmp.le.s32.totalorder (!%p262_p3), %v351_v14, %v347_v10  ;;  %v592_v55 = vsel (!%p262_p3), %vm427_vm6, %v587_v54, 0  ;;  %s1329_s27 = smov (!%p262_p3), 72  }
   0xe   : > { %s1540_s21 = smov (!%p309_p4, %s1310_s21), 1 }
   0xf   : > { %s1389_s25 = sshll.u32 %s1540_s21, 2  ;;  %s322_s11 = scalar_lea.vmem %s1528_s2, %s1540_s21 }
  0x10   : > { %s319_s28 = scalar_lea.vmem %s1527_s1, %s1389_s25  ;;  %s315_s7 = scalar_lea.vmem %s1526_s0, %s1389_s25  ;;  %v343_v9 = vld [vmem:[%s322_s11] sm:$0x1] }
  0x11   : > { %v342_v1 = vld [vmem:[%s319_s28] sm:$0xf]  ;;  %vm344_vm2 = vcmp.ne.s32.totalorder %v343_v9, 0 }
  0x12   : > { %v365_v2 = vsel %vm360_vm1, %v342_v1, 0  ;;  %v338_v3 = vld [vmem:[%s315_s7] sm:$0xf]  ;;  %v1407_v7 = vcombine.low %v342_v1, %v342_v1  ;;  %v353_v13 = vsel %vm344_vm2, 1, %v1323_v12 }
  0x13   : > { %1174 = vmatpush3.bf16.xpose.msra.mxu0 %v365_v2  ;;  %v339_v4 = vunpack.c.l.bf16 %v338_v3  ;;  %v357_v15 = vrot.slane %v353_v13, %v356_v11 }
  0x14   : > { %1191 = vmatprep.subr.bf16.mxu0 %v1320_v0  ;;  %477 = vrot.lane.b32.xlu1 %v1407_v7, %s1322_s8 }
  0x15   : > { %v340_v5 = vmul.f32 0.35355338, %v339_v4  ;;  %vm358_vm4 = vcmp.eq.s32.totalorder %v357_v15, 1 }
  0x16   : > { %vm1414_vm5 = vmand %vm358_vm4, %vm352_vm3 }
  0x17   : > { %v1401_v6 = vpack.c.bf16 %v340_v5, %v340_v5 }
  0x19   : > { %475 = vrot.lane.b32.xlu1 %v1401_v6, %s1322_s8  ;;  %s329_s8 = scalar_lea.vmem %s1531_s5, %s1389_s25 }
  0x1a   : > { %1176 = vmatmul.mubr.msk.bf16.vlgmr.msra.gmra.mrb[0].mxu0 %vm360_vm1, %v1401_v6 }
  0x1b   : > { %1193 = vmatprep.mubr.msk.bf16.mxu0 %vm1321_vm0, %v1320_v0 }
  0x86   : > { %v478_v28 = vpop.permute.xlu1 %477 }
  0x87   : > { %v483_v30 = vsel %vm360_vm1, %v478_v28, 0 }
  0x8b   : > { %v476_v32 = vpop.permute.xlu1 %475 }
  0xed   : > { %v401_v17 = vpop.f32.mrb[0].mxu0 }
  0xee   : > { %v407_v18 = vsel %vm1414_vm5, %v401_v17, -1e+09  ;;  %v1177_v19 = vpop.f32.mrb[1].mxu0 }
  0xef   : > { %v404_v20 = vpop.f32.mrb[2].mxu0  ;;  %v408_v21 = vsel %vm360_vm1, %v407_v18, -inf }
  0xf0   : > { %409 = vmax.xlane.f32.xlu0 %v408_v21  ;;  %v1178_v22 = vpop.f32.mrb[3].mxu0 }
 0x106   : > { %422 = vrot.lane.b32.xlu0 %v1407_v7, %s1324_s12 }
 0x10a   : > { %537 = vrot.lane.b32.xlu0 %v1407_v7, %s1325_s13  ;;  %s336_s13 = scalar_lea.vmem %s1532_s6, %s1389_s25 }
 0x17d   : > { %v410_v23 = vpop.xlane.xlu0 %409 }
 0x17e   : > { %v411_v24 = vsub.f32 %v407_v18, %v410_v23 }
 0x180   : > { %v412_v25 = vmul.f32 1.442695, %v411_v24 }
 0x181   : > { %v423_v26 = vpop.permute.xlu0 %422 }
 0x182   : > { %1280 = vpow2.f32 %v412_v25  ;;  %v429_v27 = vsel %vm427_vm6, %v423_v26, 0 }
 0x183   : > { %1180 = vmatpush3.bf16.msra.mxu1 %v429_v27 }
 0x184   : > { %1185 = vmatprep.subr.bf16.mxu1 %v1320_v0 }
 0x185   : > { %v538_v43 = vpop.permute.xlu0 %537 }
 0x186   : > { %v543_v44 = vsel %vm427_vm6, %v538_v43, 0 }
 0x187   : > { %1192 = vmatpush3.bf16.msra.mxu0 %v543_v44 }
 0x188   : > { %1203 = vmatprep.subr.bf16.mxu0 %v1320_v0 }
 0x18c   : > { %v1281_v29 = vpop.eup %1280 }
 0x18d   : > { %v418_v31 = vpack.c.bf16 %v1281_v29, %v1281_v29  ;;  %v414_v45 = vsel %vm360_vm1, %v1281_v29, 0.0 }
 0x18f   : > { %1182 = vmatmul.mubr.msk.bf16.vlgmr.msra.gmra.mrb[0].mxu1 %vm360_vm1, %v418_v31 }
 0x190   : > { %1186 = vmatpush3.bf16.xpose.msra.mxu1 %v483_v30  ;;  %1187 = vmatprep.mubr.msk.bf16.mxu1 %vm1321_vm0, %v1320_v0 }
 0x191   : > { %1197 = vmatprep.subr.bf16.mxu1 %v1320_v0 }
 0x197   : > { %1188 = vmatmul.mubr.msk.bf16.vlgmr.msra.gmra.mrb[4].mxu1 %vm360_vm1, %v476_v32 }
 0x198   : > { %1199 = vmatprep.mubr.msk.bf16.mxu1 %vm1321_vm0, %v1320_v0  ;;  %1198 = vmatpush3.bf16.msra.mxu1 %v592_v55 }
 0x199   : > { %1209 = vmatprep.subr.bf16.mxu1 %v1320_v0 }
 0x262   : > { %v465_v33 = vpop.f32.mrb[0].mxu1 }
 0x263   : > { %v1183_v34 = vpop.f32.mrb[1].mxu1 }
 0x264   : > { %v468_v35 = vpop.f32.mrb[2].mxu1 }
 0x265   : > { %v1184_v36 = vpop.f32.mrb[3].mxu1 }
 0x266   : > { %v792_v36 = vld [vmem:[%s1529_s3 + $0x8] sm:$0xf] }
 0x26a   : > { %v519_v37 = vpop.f32.mrb[4].mxu1 }
 0x26b   : > { %v525_v38 = vsel %vm1414_vm5, %v519_v37, -1e+09  ;;  %v1189_v39 = vpop.f32.mrb[5].mxu1  ;;  %v797_v37 = vsel %vm427_vm6, %v792_v36, 0 }
 0x26c   : > { %v522_v40 = vpop.f32.mrb[6].mxu1  ;;  %v526_v41 = vsel %vm360_vm1, %v525_v38, -inf }
 0x26d   : > { %527 = vmax.xlane.f32.xlu1 %v526_v41  ;;  %v1190_v42 = vpop.f32.mrb[7].mxu1 }
 0x27e   : > { %682 = vrot.lane.b32.xlu1 %v1407_v7, %s1326_s14 }
 0x2a2   : > { %415 = vadd.xlane.f32.xlu1 %v414_v45 }
 0x2b3   : > { %742 = vrot.lane.b32.xlu1 %v1407_v7, %s1327_s19 }
 0x2b7   : > { %840 = vrot.lane.b32.xlu1 %v1401_v6, %s1328_s20 }
 0x2fa   : > { %v528_v46 = vpop.xlane.xlu1 %527 }
 0x2fb   : > { %v529_v47 = vsub.f32 %v525_v38, %v528_v46 }
 0x2fd   : > { %v530_v48 = vmul.f32 1.442695, %v529_v47 }
 0x2fe   : > { %v683_v56 = vpop.permute.xlu1 %682 }
 0x2ff   : > { %1282 = vpow2.f32 %v530_v48  ;;  %v688_v4 = vsel %vm360_vm1, %v683_v56, 0 }
 0x309   : > { %v1283_v50 = vpop.eup %1282 }
 0x30a   : > { %v532_v51 = vsel %vm360_vm1, %v1283_v50, 0.0  ;;  %v536_v52 = vpack.c.bf16 %v1283_v50, %v1283_v50 }
 0x30b   : > { %533 = vadd.xlane.f32.xlu0 %v532_v51 }
 0x30c   : > { %1194 = vmatmul.mubr.msk.bf16.vlgmr.msra.gmra.mrb[4].mxu0 %vm360_vm1, %v536_v52 }
 0x30d   : > { %1204 = vmatpush3.bf16.msra.mxu0 %v638_v53  ;;  %1205 = vmatprep.mubr.msk.bf16.mxu0 %vm1321_vm0, %v1320_v0 }
 0x30e   : > { %1215 = vmatprep.subr.bf16.mxu0 %v1320_v0 }
 0x321   : > { %680 = vrot.lane.b32.xlu0 %v1401_v6, %s1326_s14 }
 0x32f   : > { %v416_v57 = vpop.xlane.xlu1 %415 }
 0x330   : > { %1284 = vrcp.f32 %v416_v57 }
 0x333   : > { %v743_v26 = vpop.permute.xlu1 %742 }
 0x334   : > { %v748_v27 = vsel %vm427_vm6, %v743_v26, 0 }
 0x337   : > { %v841_v35 = vpop.permute.xlu1 %840 }
 0x33a   : > { %v1285_v58 = vpop.eup %1284 }
 0x33b   : > { %v471_v59 = vmul.f32 %v1285_v58, %v465_v33  ;;  %v957_v58 = vsel %vm427_vm6, %v952_v16, 0 }
 0x33d   : > { %v472_v60 = vpack.c.bf16 %v471_v59, %v471_v59 }
 0x33f   : > { %1206 = vmatmul.mubr.msk.bf16.vlgmr.msra.gmra.mrb[8].mxu0 %vm360_vm1, %v472_v60 }
 0x340   : > { %1217 = vmatprep.mubr.msk.bf16.mxu0 %vm1321_vm0, %v1320_v0  ;;  %1216 = vmatpush3.bf16.msra.mxu0 %v748_v27 }
 0x341   : > { %1227 = vmatprep.subr.bf16.mxu0 %v1320_v0 }
 0x398   : > { %v534_v61 = vpop.xlane.xlu0 %533 }
 0x399   : > { %1286 = vrcp.f32 %v534_v61 }
 0x39c   : > { %v681_v9 = vpop.permute.xlu0 %680 }
 0x3a3   : > { %v1287_v62 = vpop.eup %1286 }
 0x3df   : > { %v579_v63 = vpop.f32.mrb[4].mxu0 }
 0x3e0   : > { %v585_v1 = vmul.f32 %v1287_v62, %v579_v63  ;;  %v1195_v2 = vpop.f32.mrb[5].mxu0 }
 0x3e1   : > { %v582_v3 = vpop.f32.mrb[6].mxu0 }
 0x3e2   : > { %v586_v5 = vpack.c.bf16 %v585_v1, %v585_v1  ;;  %v1196_v8 = vpop.f32.mrb[7].mxu0 }
 0x3e4   : > { %1200 = vmatmul.mubr.msk.bf16.vlgmr.msra.gmra.mrb[8].mxu1 %vm360_vm1, %v586_v5 }
 0x3e5   : > { %1210 = vmatpush3.bf16.xpose.msra.mxu1 %v688_v4  ;;  %1211 = vmatprep.mubr.msk.bf16.mxu1 %vm1321_vm0, %v1320_v0 }
 0x3e6   : > { %1221 = vmatprep.subr.bf16.mxu1 %v1320_v0 }
 0x3ec   : > { %1212 = vmatmul.mubr.msk.bf16.vlgmr.msra.gmra.mrb[12].mxu1 %vm360_vm1, %v681_v9 }
 0x3ed   : > { %1223 = vmatprep.mubr.msk.bf16.mxu1 %vm1321_vm0, %v1320_v0  ;;  %1222 = vmatpush3.bf16.msra.mxu1 %v797_v37 }
 0x3ee   : > { %1233 = vmatprep.subr.bf16.mxu1 %v1320_v0 }
 0x412   : > { %v674_v10 = vpop.f32.mrb[8].mxu0 }
 0x413   : > { %v1207_v11 = vpop.f32.mrb[9].mxu0 }
 0x414   : > { %v677_v12 = vpop.f32.mrb[10].mxu0  ;;  %v1000_v11 = vld [vmem:[%s329_s8] sm:$0xf] }
 0x415   : > { %v1208_v13 = vpop.f32.mrb[11].mxu0  ;;  %v1001_v12 = vunpack.c.l.bf16 %v1000_v11 }
 0x4b7   : > { %v628_v14 = vpop.f32.mrb[8].mxu1 }
 0x4b8   : > { %v1468_v15 = vadd.f32 %v674_v10, %v628_v14  ;;  %v1201_v17 = vpop.f32.mrb[9].mxu1 }
 0x4b9   : > { %v631_v18 = vpop.f32.mrb[10].mxu1  ;;  %v1146_v17 = vld [vmem:[%s1530_s4] ss:$0 sm:$0xff] }
 0x4ba   : > { %v1202_v19 = vpop.f32.mrb[11].mxu1 }
 0x4bf   : > { %v724_v20 = vpop.f32.mrb[12].mxu1 }
 0x4c0   : > { %v730_v21 = vsel %vm1414_vm5, %v724_v20, -1e+09  ;;  %v1213_v22 = vpop.f32.mrb[13].mxu1 }
 0x4c1   : > { %v727_v23 = vpop.f32.mrb[14].mxu1  ;;  %v731_v24 = vsel %vm360_vm1, %v730_v21, -inf }
 0x4c2   : > { %732 = vmax.xlane.f32.xlu0 %v731_v24  ;;  %v1214_v25 = vpop.f32.mrb[15].mxu1 }
 0x4d8   : > { %842 = vrot.lane.b32.xlu0 %v1407_v7, %s1328_s20 }
 0x54f   : > { %v733_v6 = vpop.xlane.xlu0 %732 }
 0x550   : > { %v734_v28 = vsub.f32 %v730_v21, %v733_v6 }
 0x552   : > { %v735_v29 = vmul.f32 1.442695, %v734_v28 }
 0x553   : > { %v843_v30 = vpop.permute.xlu0 %842 }
 0x554   : > { %1288 = vpow2.f32 %v735_v29  ;;  %v848_v32 = vsel %vm360_vm1, %v843_v30, 0 }
 0x55e   : > { %v1289_v31 = vpop.eup %1288 }
 0x55f   : > { %v737_v33 = vsel %vm360_vm1, %v1289_v31, 0.0  ;;  %v741_v34 = vpack.c.bf16 %v1289_v31, %v1289_v31 }
 0x560   : > { %738 = vadd.xlane.f32.xlu1 %v737_v33 }
 0x561   : > { %1218 = vmatmul.mubr.msk.bf16.vlgmr.msra.gmra.mrb[12].mxu0 %vm360_vm1, %v741_v34 }
 0x562   : > { %1228 = vmatpush3.bf16.xpose.msra.mxu0 %v848_v32  ;;  %1229 = vmatprep.mubr.msk.bf16.mxu0 %vm1321_vm0, %v1320_v0 }
 0x563   : > { %1239 = vmatprep.subr.bf16.mxu0 %v1320_v0 }
 0x569   : > { %1230 = vmatmul.mubr.msk.bf16.vlgmr.msra.gmra.mrb[16].mxu0 %vm360_vm1, %v841_v35 }
 0x56a   : > { %1241 = vmatprep.mubr.msk.bf16.mxu0 %vm1321_vm0, %v1320_v0  ;;  %1240 = vmatpush3.bf16.msra.mxu0 %v957_v58 }
 0x571   : > { %902 = vrot.lane.b32.xlu1 %v1407_v7, %s1329_s27 }
 0x5ed   : > { %v739_v38 = vpop.xlane.xlu1 %738 }
 0x5ee   : > { %1290 = vrcp.f32 %v739_v38 }
 0x5f1   : > { %v903_v51 = vpop.permute.xlu1 %902 }
 0x5f2   : > { %v908_v52 = vsel %vm427_vm6, %v903_v51, 0 }
 0x5f8   : > { %v1291_v39 = vpop.eup %1290 }
 0x634   : > { %v784_v40 = vpop.f32.mrb[12].mxu0 }
 0x635   : > { %v790_v41 = vmul.f32 %v1291_v39, %v784_v40  ;;  %v1219_v42 = vpop.f32.mrb[13].mxu0 }
 0x636   : > { %v787_v43 = vpop.f32.mrb[14].mxu0 }
 0x637   : > { %v791_v44 = vpack.c.bf16 %v790_v41, %v790_v41  ;;  %v1220_v45 = vpop.f32.mrb[15].mxu0 }
 0x639   : > { %1224 = vmatmul.mubr.msk.bf16.vlgmr.msra.gmra.mrb[16].mxu1 %vm360_vm1, %v791_v44 }
 0x63a   : > { %1235 = vmatprep.mubr.msk.bf16.mxu1 %vm1321_vm0, %v1320_v0  ;;  %1234 = vmatpush3.bf16.msra.mxu1 %v908_v52 }
 0x63c   : > { %v884_v46 = vpop.f32.mrb[16].mxu0 }
 0x63d   : > { %v890_v47 = vsel %vm1414_vm5, %v884_v46, -1e+09  ;;  %v1231_v48 = vpop.f32.mrb[17].mxu0 }
 0x63e   : > { %v887_v7 = vpop.f32.mrb[18].mxu0  ;;  %v891_v49 = vsel %vm360_vm1, %v890_v47, -inf }
 0x63f   : > { %892 = vmax.xlane.f32.xlu0 %v891_v49  ;;  %v1232_v50 = vpop.f32.mrb[19].mxu0 }
 0x6cc   : > { %v893_v53 = vpop.xlane.xlu0 %892 }
 0x6cd   : > { %v894_v54 = vsub.f32 %v890_v47, %v893_v53 }
 0x6cf   : > { %v895_v55 = vmul.f32 1.442695, %v894_v54 }
 0x6d1   : > { %1292 = vpow2.f32 %v895_v55 }
 0x6db   : > { %v1293_v56 = vpop.eup %1292 }
 0x6dc   : > { %v897_v0 = vsel %vm360_vm1, %v1293_v56, 0.0  ;;  %v901_v57 = vpack.c.bf16 %v1293_v56, %v1293_v56 }
 0x6dd   : > { %898 = vadd.xlane.f32.xlu0 %v897_v0 }
 0x6de   : > { %1236 = vmatmul.mubr.msk.bf16.vlgmr.msra.gmra.mrb[20].mxu1 %vm360_vm1, %v901_v57 }
 0x70c   : > { %v833_v59 = vpop.f32.mrb[16].mxu1 }
 0x70d   : > { %v839_v60 = vadd.f32 %v833_v59, %v1468_v15  ;;  %v1225_v61 = vpop.f32.mrb[17].mxu1 }
 0x70e   : > { %v836_v62 = vpop.f32.mrb[18].mxu1 }
 0x70f   : > { %v1226_v63 = vpop.f32.mrb[19].mxu1 }
 0x76a   : > { %v899_v1 = vpop.xlane.xlu0 %898 }
 0x76b   : > { %1294 = vrcp.f32 %v899_v1 }
 0x775   : > { %v1295_v2 = vpop.eup %1294 }
 0x7b1   : > { %v944_v3 = vpop.f32.mrb[20].mxu1 }
 0x7b2   : > { %v950_v4 = vmul.f32 %v1295_v2, %v944_v3  ;;  %v1237_v5 = vpop.f32.mrb[21].mxu1 }
 0x7b3   : > { %v947_v8 = vpop.f32.mrb[22].mxu1 }
 0x7b4   : > { %v951_v9 = vpack.c.bf16 %v950_v4, %v950_v4  ;;  %v1238_v10 = vpop.f32.mrb[23].mxu1 }
 0x7b6   : > { %1242 = vmatmul.mubr.msk.bf16.vlgmr.msra.gmra.mrb[20].mxu0 %vm360_vm1, %v951_v9 }
 0x889   : > { %v993_v13 = vpop.f32.mrb[20].mxu0 }
 0x88a   : > { %v999_v14 = vadd.f32 %v993_v13, %v839_v60  ;;  %v1243_v15 = vpop.f32.mrb[21].mxu0 }
 0x88b   : > { %v996_v18 = vpop.f32.mrb[22].mxu0 }
 0x88c   : > { %v1002_v19 = vadd.f32 %v1001_v12, %v999_v14  ;;  %v1244_v20 = vpop.f32.mrb[23].mxu0 }
 0x88e   : > { %v1010_v21 = vadd.f32 %v1146_v17, %v1002_v19 }
 0x890   : > { %v1011_v22 = vpack.c.bf16 %v1010_v21, %v1010_v21 }
 0x892   : > { %1013 = vst.msk [vmem:[%s336_s13] sm:$0xf] %vm1012_vm7, %v1011_v22 }
 0x893 PF: > { %s16_s23 = sadd.s32 1, %s1318_s23   ;;  %s1535_s21 = smov %s1314_s22 }
 0x894   : > { %p13_p5 = scmp.ge.s32.totalorder %s16_s23, 4   ;;  %s1536_s22 = smov %s1538_s24 }
 0x896   :  { %15 = sbr.rel (!%p13_p5) target bundleno = 2 (0x2), region = 83 }

// kernel: decoder_forward.18
= control target key start
LH: loop header
LB: loop body
LE: loop exit
PB: predicated region body
PF: predicated region fallthrough
CT: control target
= control target key end

     0   :  { %vm37_vm0 = vcmask 261120   ;;  %v357_v16 = vmov 0.0   ;;  %vm358_vm1 = vmmov 0   ;;  %vm205_vm6 = vcmask 523264   ;;  %s458_s0 = inlined_call_operand.vmem [shape: bf16[16,32], index: 0, kind: input, shape index: {}]   ;;  %s459_s3 = inlined_call_operand.vmem [shape: bf16[32,64], index: 3, kind: input, shape index: {}]   ;;  %s460_s5 = inlined_call_operand.vmem [shape: bf16[64,32], index: 5, kind: input, shape index: {}]   ;;  %s461_s1 = inlined_call_operand.vmem [shape: f32[1,32], index: 1, kind: input, shape index: {}]   ;;  %s462_s2 = inlined_call_operand.vmem [shape: f32[1,32], index: 2, kind: input, shape index: {}]   ;;  %s463_s4 = inlined_call_operand.vmem [shape: f32[1,64], index: 4, kind: input, shape index: {}]   ;;  %s464_s6 = inlined_call_operand.vmem [shape: f32[1,32], index: 6, kind: input, shape index: {}]   ;;  %s465_s7 = inlined_call_operand.vmem [shape: bf16[16,32], index: 7, kind: output, shape index: {}]  }
   0x1   :  { %v306_v0 = vld [vmem:[%s458_s0] sm:$0xff]   ;;  %321 = vmatprep.subr.bf16.mxu0 %v357_v16  ;;  %97 = vst.msk [vmem:[#allocation3] sm:$0xff] %vm37_vm0, %v357_v16  ;;  %98 = vst.msk [vmem:[#allocation3 + $0x8] sm:$0xff] %vm37_vm0, %v357_v16  ;;  %329 = vmatprep.subr.bf16.mxu1 %v357_v16  ;;  %v344_v17 = vld [vmem:[%s459_s3 + $0x8] sm:$0xff]   ;;  %vm282_vm7 = vcmask 257024  }
   0x2   :  { %v402_v1 = vunpack.c.l.bf16 %v306_v0  ;;  %v404_v2 = vunpack.c.h.bf16 %v306_v0  ;;  %v343_v15 = vld [vmem:[%s459_s3] sm:$0xff]   ;;  %325 = vmatprep.mubr.msk.bf16.mxu0 %vm358_vm1, %v357_v16  ;;  %337 = vmatprep.mubr.msk.bf16.mxu1 %vm358_vm1, %v357_v16  ;;  %v346_v19 = vld [vmem:[%s460_s5 + $0x8] sm:$0xff]   ;;  %v347_v48 = vld [vmem:[%s460_s5 + $0x10] sm:$0xff]  }
   0x3   :  { %322 = vmatpush3.bf16.msra.mxu0 %v343_v15  ;;  %v345_v18 = vld [vmem:[%s460_s5] sm:$0xff]   ;;  %v348_v49 = vld [vmem:[%s460_s5 + $0x18] sm:$0xff]  }
   0x4   :  { %v38_v3 = vsel %vm37_vm0, %v402_v1, 0.0  ;;  %v41_v4 = vsel %vm37_vm0, %v404_v2, 0.0  ;;  %323 = vmatprep.subr.bf16.mxu0 %v357_v16  ;;  %330 = vmatpush3.bf16.msra.mxu1 %v345_v18  ;;  %v289_v36 = vld [vmem:[%s461_s1] ss:$0 sm:$0xff] }
   0x5   :  { %39 = vadd.xlane.f32.xlu0 %v38_v3  ;;  %331 = vmatprep.subr.bf16.mxu1 %v357_v16  ;;  %v290_v42 = vld [vmem:[%s462_s2] ss:$0 sm:$0xff] }
   0x6   :  { %v291_v50 = vld [vmem:[%s463_s4] ss:$0 sm:$0xff] }
   0x7   :  { %324 = vmatpush3.bf16.msra.mxu0 %v344_v17 }
   0x8   :  { %332 = vmatpush3.bf16.msra.mxu1 %v346_v19  ;;  %v171_v60 = vld [vmem:[#allocation3] sm:$0xff]  ;;  %v172_v62 = vld [vmem:[#allocation3 + $0x8] sm:$0xff] }
   0x9   :  { %42 = vadd.xlane.f32.xlu0 %v41_v4  ;;  %333 = vmatprep.subr.bf16.mxu1 %v357_v16 }
   0xc   :  { %334 = vmatpush3.bf16.msra.mxu1 %v347_v48 }
   0xd   :  { %335 = vmatprep.subr.bf16.mxu1 %v357_v16 }
  0x10   :  { %336 = vmatpush3.bf16.msra.mxu1 %v348_v49 }
  0x92   :  { %v40_v5 = vpop.xlane.xlu0 %39 }
  0x93   :  { %v45_v6 = vmul.f32 0.03125, %v40_v5 }
  0x95   :  { %v47_v7 = vsub.f32 %v402_v1, %v45_v6 }
  0x96   :  { %v43_v8 = vpop.xlane.xlu0 %42 }
  0x97   :  { %v46_v9 = vmul.f32 0.03125, %v43_v8  ;;  %v49_v10 = vmul.f32 %v47_v7, %v47_v7  ;;  %v83_v38 = vmul.f32 %v289_v36, %v47_v7  ;;  %v300_v7 = vld [vmem:[%s464_s6] ss:$0 sm:$0xff] }
  0x99   :  { %v48_v11 = vsub.f32 %v404_v2, %v46_v9  ;;  %v51_v12 = vsel %vm37_vm0, %v49_v10, 0.0 }
  0x9a   :  { %52 = vadd.xlane.f32.xlu1 %v51_v12 }
  0x9b   :  { %v50_v13 = vmul.f32 %v48_v11, %v48_v11  ;;  %v84_v39 = vmul.f32 %v289_v36, %v48_v11 }
  0x9d   :  { %v54_v14 = vsel %vm37_vm0, %v50_v13, 0.0 }
  0x9e   :  { %55 = vadd.xlane.f32.xlu1 %v54_v14 }
 0x127   :  { %v53_v20 = vpop.xlane.xlu1 %52 }
 0x128   :  { %v57_v21 = vmul.f32 0.032258064, %v53_v20 }
 0x12a   :  { %349 = vrsqrt.f32 %v57_v21  ;;  %vm61_vm2 = vcmp.eq.f32.partialorder %v57_v21, inf  ;;  %v64_v26 = vand.u32 2147483648, %v57_v21  ;;  %vm63_vm3 = vcmp.eq.f32.partialorder %v57_v21, 0.0 }
 0x12b   :  { %v56_v22 = vpop.xlane.xlu1 %55 }
 0x12c   :  { %v58_v23 = vmul.f32 0.032258064, %v56_v22 }
 0x12e   :  { %351 = vrsqrt.f32 %v58_v23  ;;  %vm68_vm4 = vcmp.eq.f32.partialorder %v58_v23, inf  ;;  %v71_v32 = vand.u32 2147483648, %v58_v23  ;;  %vm70_vm5 = vcmp.eq.f32.partialorder %v58_v23, 0.0 }
 0x134   :  { %v350_v24 = vpop.eup %349 }
 0x135   :  { %v60_v25 = vmul.f32 %v350_v24, %v57_v21 }
 0x137   :  { %v62_v27 = vsel %vm61_vm2, %v57_v21, %v60_v25 }
 0x138   :  { %v352_v28 = vpop.eup %351  ;;  %v65_v29 = vsel %vm63_vm3, %v64_v26, %v62_v27 }
 0x139   :  { %v73_v30 = vadd.f32 1e-06, %v65_v29  ;;  %v67_v31 = vmul.f32 %v352_v28, %v58_v23 }
 0x13b   :  { %353 = vrcp.f32 %v73_v30  ;;  %v69_v33 = vsel %vm68_vm4, %v58_v23, %v67_v31 }
 0x13c   :  { %v72_v34 = vsel %vm70_vm5, %v71_v32, %v69_v33 }
 0x13d   :  { %v74_v35 = vadd.f32 1e-06, %v72_v34 }
 0x13f   :  { %355 = vrcp.f32 %v74_v35 }
 0x145   :  { %v354_v37 = vpop.eup %353 }
 0x146   :  { %v85_v40 = vmul.f32 %v354_v37, %v83_v38 }
 0x148   :  { %v93_v44 = vadd.f32 %v290_v42, %v85_v40 }
 0x149   :  { %v356_v41 = vpop.eup %355 }
 0x14a   :  { %v86_v43 = vmul.f32 %v356_v41, %v84_v39 }
 0x14c   :  { %v94_v45 = vadd.f32 %v290_v42, %v86_v43 }
 0x14e   :  { %v95_v46 = vpack.c.bf16 %v94_v45, %v93_v44 }
 0x150   :  { %96 = vst.msk [vmem:[#allocation2] sm:$0xff] %vm37_vm0, %v95_v46 }
 0x157   :  { %v99_v47 = vld [vmem:[#allocation2] sm:$0xff] }
 0x158   :  { %326 = vmatmul.mubr.msk.bf16.vlgmr.msra.gmra.mrb[0].mxu0 %vm37_vm0, %v99_v47 }
 0x22b   :  { %v161_v51 = vpop.f32.mrb[0].mxu0 }
 0x22c   :  { %v162_v52 = vadd.f32 %v291_v50, %v161_v51  ;;  %v327_v53 = vpop.f32.mrb[1].mxu0 }
 0x22d   :  { %v164_v54 = vpop.f32.mrb[2].mxu0 }
 0x22e   :  { %v165_v55 = vadd.f32 %v291_v50, %v164_v54  ;;  %v328_v56 = vpop.f32.mrb[3].mxu0  ;;  %v168_v57 = vmax.f32 %v162_v52, 0.0 }
 0x230   :  { %v169_v58 = vmax.f32 %v165_v55, 0.0 }
 0x232   :  { %v170_v59 = vpack.c.bf16 %v169_v58, %v168_v57 }
 0x234   :  { %338 = vmatmul.mubr.msk.bf16.vlgmr.msra.gmra.mrb[0].mxu1 %vm205_vm6, %v170_v59 }
 0x307   :  { %v243_v61 = vpop.f32.mrb[0].mxu1 }
 0x308   :  { %v250_v63 = vadd.f32 %v243_v61, %v171_v60  ;;  %v339_v0 = vpop.f32.mrb[1].mxu1 }
 0x309   :  { %v246_v3 = vpop.f32.mrb[2].mxu1 }
 0x30a   :  { %252 = vst.msk [vmem:[#allocation3] sm:$0xff] %vm37_vm0, %v250_v63  ;;  %v251_v4 = vadd.f32 %v246_v3, %v172_v62  ;;  %v340_v5 = vpop.f32.mrb[3].mxu1 }
 0x30c   :  { %253 = vst.msk [vmem:[#allocation3 + $0x8] sm:$0xff] %vm37_vm0, %v251_v4 }
 0x311   :  { %v261_v6 = vld [vmem:[#allocation3] sm:$0xff] }
 0x312   :  { %v263_v8 = vadd.f32 %v402_v1, %v261_v6 }
 0x313   :  { %v262_v9 = vld [vmem:[#allocation3 + $0x8] sm:$0xff] }
 0x314   :  { %v272_v10 = vadd.f32 %v300_v7, %v263_v8  ;;  %v264_v11 = vadd.f32 %v404_v2, %v262_v9 }
 0x316   :  { %v303_v12 = vpack.c.bf16 %v272_v10, %v272_v10  ;;  %v273_v13 = vadd.f32 %v300_v7, %v264_v11 }
 0x318   :  { %283 = vst.msk [vmem:[%s465_s7] sm:$0xf] %vm282_vm7, %v303_v12  ;;  %v304_v14 = vpack.c.bf16 %v273_v13, %v273_v13 }
 0x31a   :  { %284 = vst.msk [vmem:[%s465_s7 + $0x4] sm:$0xf] %vm282_vm7, %v304_v14 }

// kernel: decoder_forward.17
= control target key start
LH: loop header
LB: loop body
LE: loop exit
PB: predicated region body
PF: predicated region fallthrough
CT: control target
= control target key end

     0   :  { %s1356_s21 = smov 0   ;;  %s1358_s22 = smov 0   ;;  %s1516_s0 = inlined_call_operand.vmem [shape: bf16[2,8,32], index: 0, kind: input, shape index: {}]   ;;  %s1517_s1 = inlined_call_operand.vmem [shape: bf16[2,8,64], index: 1, kind: input, shape index: {}]   ;;  %s1518_s2 = inlined_call_operand.vmem [shape: s32[2,1,8], index: 2, kind: input, shape index: {}]   ;;  %s1519_s3 = inlined_call_operand.vmem [shape: bf16[32,32], index: 3, kind: input, shape index: {}]   ;;  %s1520_s4 = inlined_call_operand.vmem [shape: f32[1,32], index: 4, kind: input, shape index: {}]   ;;  %s1521_s5 = inlined_call_operand.vmem [shape: bf16[2,8,32], index: 5, kind: input, shape index: {}]   ;;  %s1522_s6 = inlined_call_operand.vmem [shape: bf16[2,8,32], index: 6, kind: output, shape index: {}]  }
   0x1   :  { %s1360_s23 = smov 0  }
   0x2 LB: > { %s28_s24 = sadd.s32 1, %s1305_s22  ;;  %p1119_p0 = scmp.ge.s32.totalorder %s1309_s23, 1  ;;  %s1309_s23 = sphi %s1360_s23, %s16_s23   ;;  %s1305_s22 = sphi %s1358_s22, %s1524_s22   ;;  %s1301_s21 = sphi %s1356_s21, %s1523_s21  }
   0x3   : > { %p30_p1 = scmp.ge.s32.totalorder %s28_s24, 2  ;;  %p261_p2 = scmp.lt.s32.totalorder %s1309_s23, 3 }
   0x5   : > { %s1526_s24 = smov (%p30_p1, %s28_s24), 0  ;;  %p262_p3 = pnand %p1119_p0, %p261_p2 }
   0x6   : > { %p309_p4 = scmp.lt.s32.totalorder (!%p262_p3), %s1301_s21, 1  ;;  %v1311_v0 = vmov (!%p262_p3), 0.0   ;;  %vm1312_vm0 = vmmov (!%p262_p3), 0   ;;  %vm345_vm1 = vcmask (!%p262_p3), 64512   ;;  %s1313_s8 = smov (!%p262_p3), 120   ;;  %v393_v8 = vlaneseq (!%p262_p3) }
   0x7   : > { %265 = sbr.rel (%p262_p3) target bundleno = 2195 (0x893), region = 44  ;;  %1164 = vmatprep.subr.bf16.mxu0 (!%p262_p3), %v1311_v0  ;;  %1166 = vmatprep.mubr.msk.bf16.mxu0 (!%p262_p3), %vm1312_vm0, %v1311_v0  ;;  %v1314_v12 = vmov (!%p262_p3), 0   ;;  %s1315_s12 = smov (!%p262_p3), 96   ;;  %vm418_vm4 = vcmask (!%p262_p3), 1043456   ;;  %v464_v47 = vld [vmem:[%s1519_s3] sm:$0xf] (!%p262_p3) }
   0x8   : > { %1170 = vmatprep.subr.bf16.mxu1 (!%p262_p3), %v1311_v0  ;;  %1172 = vmatprep.mubr.msk.bf16.mxu1 (!%p262_p3), %vm1312_vm0, %v1311_v0  ;;  %v394_v10 = vshrl.u32 (!%p262_p3), %v393_v8, 7  ;;  %s1316_s13 = smov (!%p262_p3), 88   ;;  %s1317_s14 = smov (!%p262_p3), 112   ;;  %v629_v51 = vsel (!%p262_p3), %vm418_vm4, %v464_v47, 0  ;;  %v578_v52 = vld [vmem:[%s1519_s3 + $0x4] sm:$0xf] (!%p262_p3) }
   0x9   : > { %v583_v53 = vsel (!%p262_p3), %vm418_vm4, %v578_v52, 0  ;;  %s1318_s19 = smov (!%p262_p3), 80   ;;  %s1319_s20 = smov (!%p262_p3), 104   ;;  %vm1003_vm5 = vcmask (!%p262_p3), 257024  }
   0xa   : > { %v395_v11 = vsub.s32 (!%p262_p3), 0, %v394_v10  ;;  %s1320_s27 = smov (!%p262_p3), 72  }
   0xe   : > { %s1528_s21 = smov (!%p309_p4, %s1301_s21), 1 }
   0xf   : > { %s1380_s25 = sshll.u32 %s1528_s21, 2  ;;  %s322_s11 = scalar_lea.vmem %s1518_s2, %s1528_s21 }
  0x10   : > { %s319_s28 = scalar_lea.vmem %s1517_s1, %s1380_s25  ;;  %s315_s7 = scalar_lea.vmem %s1516_s0, %s1380_s25  ;;  %v343_v9 = vld [vmem:[%s322_s11] sm:$0x1] }
  0x11   : > { %v342_v1 = vld [vmem:[%s319_s28] sm:$0xf]  ;;  %vm344_vm2 = vcmp.ne.s32.totalorder %v343_v9, 0 }
  0x12   : > { %v350_v2 = vsel %vm345_vm1, %v342_v1, 0  ;;  %v338_v3 = vld [vmem:[%s315_s7] sm:$0xf]  ;;  %v1398_v7 = vcombine.low %v342_v1, %v342_v1  ;;  %v392_v13 = vsel %vm344_vm2, 1, %v1314_v12 }
  0x13   : > { %1165 = vmatpush3.bf16.xpose.msra.mxu0 %v350_v2  ;;  %v339_v4 = vunpack.c.l.bf16 %v338_v3  ;;  %v1405_v14 = vrot.slane %v392_v13, %v395_v11 }
  0x14   : > { %1182 = vmatprep.subr.bf16.mxu0 %v1311_v0  ;;  %468 = vrot.lane.b32.xlu1 %v1398_v7, %s1313_s8 }
  0x15   : > { %v340_v5 = vmul.f32 0.35355338, %v339_v4  ;;  %vm397_vm3 = vcmp.eq.s32.totalorder %v1405_v14, 1  ;;  %v943_v14 = vld [vmem:[%s1519_s3 + $0xc] sm:$0xf] }
  0x17   : > { %v1392_v6 = vpack.c.bf16 %v340_v5, %v340_v5 }
  0x19   : > { %466 = vrot.lane.b32.xlu1 %v1392_v6, %s1313_s8  ;;  %s329_s8 = scalar_lea.vmem %s1521_s5, %s1380_s25 }
  0x1a   : > { %1167 = vmatmul.mubr.msk.bf16.vlgmr.msra.gmra.mrb[0].mxu0 %vm345_vm1, %v1392_v6 }
  0x1b   : > { %1184 = vmatprep.mubr.msk.bf16.mxu0 %vm1312_vm0, %v1311_v0 }
  0x86   : > { %v469_v26 = vpop.permute.xlu1 %468 }
  0x87   : > { %v474_v28 = vsel %vm345_vm1, %v469_v26, 0 }
  0x8b   : > { %v467_v30 = vpop.permute.xlu1 %466 }
  0xed   : > { %v386_v15 = vpop.f32.mrb[0].mxu0 }
  0xee   : > { %v398_v16 = vsel %vm397_vm3, %v386_v15, -1e+09  ;;  %v1168_v17 = vpop.f32.mrb[1].mxu0 }
  0xef   : > { %v389_v18 = vpop.f32.mrb[2].mxu0  ;;  %v399_v19 = vsel %vm345_vm1, %v398_v16, -inf }
  0xf0   : > { %400 = vmax.xlane.f32.xlu0 %v399_v19  ;;  %v1169_v20 = vpop.f32.mrb[3].mxu0 }
 0x106   : > { %413 = vrot.lane.b32.xlu0 %v1398_v7, %s1315_s12 }
 0x10a   : > { %528 = vrot.lane.b32.xlu0 %v1398_v7, %s1316_s13  ;;  %s336_s13 = scalar_lea.vmem %s1522_s6, %s1380_s25 }
 0x17d   : > { %v401_v21 = vpop.xlane.xlu0 %400 }
 0x17e   : > { %v402_v22 = vsub.f32 %v398_v16, %v401_v21 }
 0x180   : > { %v403_v23 = vmul.f32 1.442695, %v402_v22 }
 0x181   : > { %v414_v24 = vpop.permute.xlu0 %413 }
 0x182   : > { %1271 = vpow2.f32 %v403_v23  ;;  %v420_v25 = vsel %vm418_vm4, %v414_v24, 0 }
 0x183   : > { %1171 = vmatpush3.bf16.msra.mxu1 %v420_v25 }
 0x184   : > { %1176 = vmatprep.subr.bf16.mxu1 %v1311_v0 }
 0x185   : > { %v529_v41 = vpop.permute.xlu0 %528 }
 0x186   : > { %v534_v42 = vsel %vm418_vm4, %v529_v41, 0 }
 0x187   : > { %1183 = vmatpush3.bf16.msra.mxu0 %v534_v42 }
 0x188   : > { %1194 = vmatprep.subr.bf16.mxu0 %v1311_v0 }
 0x18c   : > { %v1272_v27 = vpop.eup %1271 }
 0x18d   : > { %v409_v29 = vpack.c.bf16 %v1272_v27, %v1272_v27  ;;  %v405_v43 = vsel %vm345_vm1, %v1272_v27, 0.0 }
 0x18f   : > { %1173 = vmatmul.mubr.msk.bf16.vlgmr.msra.gmra.mrb[0].mxu1 %vm345_vm1, %v409_v29 }
 0x190   : > { %1177 = vmatpush3.bf16.xpose.msra.mxu1 %v474_v28  ;;  %1178 = vmatprep.mubr.msk.bf16.mxu1 %vm1312_vm0, %v1311_v0 }
 0x191   : > { %1188 = vmatprep.subr.bf16.mxu1 %v1311_v0 }
 0x197   : > { %1179 = vmatmul.mubr.msk.bf16.vlgmr.msra.gmra.mrb[4].mxu1 %vm345_vm1, %v467_v30 }
 0x198   : > { %1190 = vmatprep.mubr.msk.bf16.mxu1 %vm1312_vm0, %v1311_v0  ;;  %1189 = vmatpush3.bf16.msra.mxu1 %v583_v53 }
 0x199   : > { %1200 = vmatprep.subr.bf16.mxu1 %v1311_v0 }
 0x262   : > { %v456_v31 = vpop.f32.mrb[0].mxu1 }
 0x263   : > { %v1174_v32 = vpop.f32.mrb[1].mxu1 }
 0x264   : > { %v459_v33 = vpop.f32.mrb[2].mxu1 }
 0x265   : > { %v1175_v34 = vpop.f32.mrb[3].mxu1 }
 0x266   : > { %v783_v34 = vld [vmem:[%s1519_s3 + $0x8] sm:$0xf] }
 0x26a   : > { %v510_v35 = vpop.f32.mrb[4].mxu1 }
 0x26b   : > { %v516_v36 = vsel %vm397_vm3, %v510_v35, -1e+09  ;;  %v1180_v37 = vpop.f32.mrb[5].mxu1  ;;  %v788_v35 = vsel %vm418_vm4, %v783_v34, 0 }
 0x26c   : > { %v513_v38 = vpop.f32.mrb[6].mxu1  ;;  %v517_v39 = vsel %vm345_vm1, %v516_v36, -inf }
 0x26d   : > { %518 = vmax.xlane.f32.xlu1 %v517_v39  ;;  %v1181_v40 = vpop.f32.mrb[7].mxu1 }
 0x27e   : > { %673 = vrot.lane.b32.xlu1 %v1398_v7, %s1317_s14 }
 0x2a2   : > { %406 = vadd.xlane.f32.xlu1 %v405_v43 }
 0x2b3   : > { %733 = vrot.lane.b32.xlu1 %v1398_v7, %s1318_s19 }
 0x2b7   : > { %831 = vrot.lane.b32.xlu1 %v1392_v6, %s1319_s20 }
 0x2fa   : > { %v519_v44 = vpop.xlane.xlu1 %518 }
 0x2fb   : > { %v520_v45 = vsub.f32 %v516_v36, %v519_v44 }
 0x2fd   : > { %v521_v46 = vmul.f32 1.442695, %v520_v45 }
 0x2fe   : > { %v674_v54 = vpop.permute.xlu1 %673 }
 0x2ff   : > { %1273 = vpow2.f32 %v521_v46  ;;  %v679_v2 = vsel %vm345_vm1, %v674_v54, 0 }
 0x309   : > { %v1274_v48 = vpop.eup %1273 }
 0x30a   : > { %v523_v49 = vsel %vm345_vm1, %v1274_v48, 0.0  ;;  %v527_v50 = vpack.c.bf16 %v1274_v48, %v1274_v48 }
 0x30b   : > { %524 = vadd.xlane.f32.xlu0 %v523_v49 }
 0x30c   : > { %1185 = vmatmul.mubr.msk.bf16.vlgmr.msra.gmra.mrb[4].mxu0 %vm345_vm1, %v527_v50 }
 0x30d   : > { %1195 = vmatpush3.bf16.msra.mxu0 %v629_v51  ;;  %1196 = vmatprep.mubr.msk.bf16.mxu0 %vm1312_vm0, %v1311_v0 }
 0x30e   : > { %1206 = vmatprep.subr.bf16.mxu0 %v1311_v0 }
 0x321   : > { %671 = vrot.lane.b32.xlu0 %v1392_v6, %s1317_s14 }
 0x32f   : > { %v407_v55 = vpop.xlane.xlu1 %406 }
 0x330   : > { %1275 = vrcp.f32 %v407_v55 }
 0x333   : > { %v734_v24 = vpop.permute.xlu1 %733 }
 0x334   : > { %v739_v25 = vsel %vm418_vm4, %v734_v24, 0 }
 0x337   : > { %v832_v33 = vpop.permute.xlu1 %831 }
 0x33a   : > { %v1276_v56 = vpop.eup %1275 }
 0x33b   : > { %v462_v57 = vmul.f32 %v1276_v56, %v456_v31  ;;  %v948_v56 = vsel %vm418_vm4, %v943_v14, 0 }
 0x33d   : > { %v463_v58 = vpack.c.bf16 %v462_v57, %v462_v57 }
 0x33f   : > { %1197 = vmatmul.mubr.msk.bf16.vlgmr.msra.gmra.mrb[8].mxu0 %vm345_vm1, %v463_v58 }
 0x340   : > { %1208 = vmatprep.mubr.msk.bf16.mxu0 %vm1312_vm0, %v1311_v0  ;;  %1207 = vmatpush3.bf16.msra.mxu0 %v739_v25 }
 0x341   : > { %1218 = vmatprep.subr.bf16.mxu0 %v1311_v0 }
 0x398   : > { %v525_v59 = vpop.xlane.xlu0 %524 }
 0x399   : > { %1277 = vrcp.f32 %v525_v59 }
 0x39c   : > { %v672_v5 = vpop.permute.xlu0 %671 }
 0x3a3   : > { %v1278_v60 = vpop.eup %1277 }
 0x3df   : > { %v570_v61 = vpop.f32.mrb[4].mxu0 }
 0x3e0   : > { %v576_v62 = vmul.f32 %v1278_v60, %v570_v61  ;;  %v1186_v63 = vpop.f32.mrb[5].mxu0 }
 0x3e1   : > { %v573_v1 = vpop.f32.mrb[6].mxu0 }
 0x3e2   : > { %v577_v3 = vpack.c.bf16 %v576_v62, %v576_v62  ;;  %v1187_v4 = vpop.f32.mrb[7].mxu0 }
 0x3e4   : > { %1191 = vmatmul.mubr.msk.bf16.vlgmr.msra.gmra.mrb[8].mxu1 %vm345_vm1, %v577_v3 }
 0x3e5   : > { %1201 = vmatpush3.bf16.xpose.msra.mxu1 %v679_v2  ;;  %1202 = vmatprep.mubr.msk.bf16.mxu1 %vm1312_vm0, %v1311_v0 }
 0x3e6   : > { %1212 = vmatprep.subr.bf16.mxu1 %v1311_v0 }
 0x3ec   : > { %1203 = vmatmul.mubr.msk.bf16.vlgmr.msra.gmra.mrb[12].mxu1 %vm345_vm1, %v672_v5 }
 0x3ed   : > { %1214 = vmatprep.mubr.msk.bf16.mxu1 %vm1312_vm0, %v1311_v0  ;;  %1213 = vmatpush3.bf16.msra.mxu1 %v788_v35 }
 0x3ee   : > { %1224 = vmatprep.subr.bf16.mxu1 %v1311_v0 }
 0x412   : > { %v665_v8 = vpop.f32.mrb[8].mxu0 }
 0x413   : > { %v1198_v9 = vpop.f32.mrb[9].mxu0 }
 0x414   : > { %v668_v10 = vpop.f32.mrb[10].mxu0  ;;  %v991_v9 = vld [vmem:[%s329_s8] sm:$0xf] }
 0x415   : > { %v1199_v11 = vpop.f32.mrb[11].mxu0  ;;  %v992_v10 = vunpack.c.l.bf16 %v991_v9 }
 0x4b7   : > { %v619_v12 = vpop.f32.mrb[8].mxu1 }
 0x4b8   : > { %v1458_v13 = vadd.f32 %v665_v8, %v619_v12  ;;  %v1192_v15 = vpop.f32.mrb[9].mxu1 }
 0x4b9   : > { %v622_v16 = vpop.f32.mrb[10].mxu1  ;;  %v1137_v15 = vld [vmem:[%s1520_s4] ss:$0 sm:$0xff] }
 0x4ba   : > { %v1193_v17 = vpop.f32.mrb[11].mxu1 }
 0x4bf   : > { %v715_v18 = vpop.f32.mrb[12].mxu1 }
 0x4c0   : > { %v721_v19 = vsel %vm397_vm3, %v715_v18, -1e+09  ;;  %v1204_v20 = vpop.f32.mrb[13].mxu1 }
 0x4c1   : > { %v718_v21 = vpop.f32.mrb[14].mxu1  ;;  %v722_v22 = vsel %vm345_vm1, %v721_v19, -inf }
 0x4c2   : > { %723 = vmax.xlane.f32.xlu0 %v722_v22  ;;  %v1205_v23 = vpop.f32.mrb[15].mxu1 }
 0x4d8   : > { %833 = vrot.lane.b32.xlu0 %v1398_v7, %s1319_s20 }
 0x54f   : > { %v724_v6 = vpop.xlane.xlu0 %723 }
 0x550   : > { %v725_v26 = vsub.f32 %v721_v19, %v724_v6 }
 0x552   : > { %v726_v27 = vmul.f32 1.442695, %v725_v26 }
 0x553   : > { %v834_v28 = vpop.permute.xlu0 %833 }
 0x554   : > { %1279 = vpow2.f32 %v726_v27  ;;  %v839_v30 = vsel %vm345_vm1, %v834_v28, 0 }
 0x55e   : > { %v1280_v29 = vpop.eup %1279 }
 0x55f   : > { %v728_v31 = vsel %vm345_vm1, %v1280_v29, 0.0  ;;  %v732_v32 = vpack.c.bf16 %v1280_v29, %v1280_v29 }
 0x560   : > { %729 = vadd.xlane.f32.xlu1 %v728_v31 }
 0x561   : > { %1209 = vmatmul.mubr.msk.bf16.vlgmr.msra.gmra.mrb[12].mxu0 %vm345_vm1, %v732_v32 }
 0x562   : > { %1219 = vmatpush3.bf16.xpose.msra.mxu0 %v839_v30  ;;  %1220 = vmatprep.mubr.msk.bf16.mxu0 %vm1312_vm0, %v1311_v0 }
 0x563   : > { %1230 = vmatprep.subr.bf16.mxu0 %v1311_v0 }
 0x569   : > { %1221 = vmatmul.mubr.msk.bf16.vlgmr.msra.gmra.mrb[16].mxu0 %vm345_vm1, %v832_v33 }
 0x56a   : > { %1232 = vmatprep.mubr.msk.bf16.mxu0 %vm1312_vm0, %v1311_v0  ;;  %1231 = vmatpush3.bf16.msra.mxu0 %v948_v56 }
 0x571   : > { %893 = vrot.lane.b32.xlu1 %v1398_v7, %s1320_s27 }
 0x5ed   : > { %v730_v36 = vpop.xlane.xlu1 %729 }
 0x5ee   : > { %1281 = vrcp.f32 %v730_v36 }
 0x5f1   : > { %v894_v49 = vpop.permute.xlu1 %893 }
 0x5f2   : > { %v899_v50 = vsel %vm418_vm4, %v894_v49, 0 }
 0x5f8   : > { %v1282_v37 = vpop.eup %1281 }
 0x634   : > { %v775_v38 = vpop.f32.mrb[12].mxu0 }
 0x635   : > { %v781_v39 = vmul.f32 %v1282_v37, %v775_v38  ;;  %v1210_v40 = vpop.f32.mrb[13].mxu0 }
 0x636   : > { %v778_v41 = vpop.f32.mrb[14].mxu0 }
 0x637   : > { %v782_v42 = vpack.c.bf16 %v781_v39, %v781_v39  ;;  %v1211_v43 = vpop.f32.mrb[15].mxu0 }
 0x639   : > { %1215 = vmatmul.mubr.msk.bf16.vlgmr.msra.gmra.mrb[16].mxu1 %vm345_vm1, %v782_v42 }
 0x63a   : > { %1226 = vmatprep.mubr.msk.bf16.mxu1 %vm1312_vm0, %v1311_v0  ;;  %1225 = vmatpush3.bf16.msra.mxu1 %v899_v50 }
 0x63c   : > { %v875_v44 = vpop.f32.mrb[16].mxu0 }
 0x63d   : > { %v881_v45 = vsel %vm397_vm3, %v875_v44, -1e+09  ;;  %v1222_v46 = vpop.f32.mrb[17].mxu0 }
 0x63e   : > { %v878_v7 = vpop.f32.mrb[18].mxu0  ;;  %v882_v47 = vsel %vm345_vm1, %v881_v45, -inf }
 0x63f   : > { %883 = vmax.xlane.f32.xlu0 %v882_v47  ;;  %v1223_v48 = vpop.f32.mrb[19].mxu0 }
 0x6cc   : > { %v884_v51 = vpop.xlane.xlu0 %883 }
 0x6cd   : > { %v885_v52 = vsub.f32 %v881_v45, %v884_v51 }
 0x6cf   : > { %v886_v53 = vmul.f32 1.442695, %v885_v52 }
 0x6d1   : > { %1283 = vpow2.f32 %v886_v53 }
 0x6db   : > { %v1284_v54 = vpop.eup %1283 }
 0x6dc   : > { %v888_v0 = vsel %vm345_vm1, %v1284_v54, 0.0  ;;  %v892_v55 = vpack.c.bf16 %v1284_v54, %v1284_v54 }
 0x6dd   : > { %889 = vadd.xlane.f32.xlu0 %v888_v0 }
 0x6de   : > { %1227 = vmatmul.mubr.msk.bf16.vlgmr.msra.gmra.mrb[20].mxu1 %vm345_vm1, %v892_v55 }
 0x70c   : > { %v824_v57 = vpop.f32.mrb[16].mxu1 }
 0x70d   : > { %v830_v58 = vadd.f32 %v824_v57, %v1458_v13  ;;  %v1216_v59 = vpop.f32.mrb[17].mxu1 }
 0x70e   : > { %v827_v60 = vpop.f32.mrb[18].mxu1 }
 0x70f   : > { %v1217_v61 = vpop.f32.mrb[19].mxu1 }
 0x76a   : > { %v890_v62 = vpop.xlane.xlu0 %889 }
 0x76b   : > { %1285 = vrcp.f32 %v890_v62 }
 0x775   : > { %v1286_v63 = vpop.eup %1285 }
 0x7b1   : > { %v935_v1 = vpop.f32.mrb[20].mxu1 }
 0x7b2   : > { %v941_v2 = vmul.f32 %v1286_v63, %v935_v1  ;;  %v1228_v3 = vpop.f32.mrb[21].mxu1 }
 0x7b3   : > { %v938_v4 = vpop.f32.mrb[22].mxu1 }
 0x7b4   : > { %v942_v5 = vpack.c.bf16 %v941_v2, %v941_v2  ;;  %v1229_v8 = vpop.f32.mrb[23].mxu1 }
 0x7b6   : > { %1233 = vmatmul.mubr.msk.bf16.vlgmr.msra.gmra.mrb[20].mxu0 %vm345_vm1, %v942_v5 }
 0x889   : > { %v984_v11 = vpop.f32.mrb[20].mxu0 }
 0x88a   : > { %v990_v12 = vadd.f32 %v984_v11, %v830_v58  ;;  %v1234_v13 = vpop.f32.mrb[21].mxu0 }
 0x88b   : > { %v987_v16 = vpop.f32.mrb[22].mxu0 }
 0x88c   : > { %v993_v17 = vadd.f32 %v992_v10, %v990_v12  ;;  %v1235_v18 = vpop.f32.mrb[23].mxu0 }
 0x88e   : > { %v1001_v19 = vadd.f32 %v1137_v15, %v993_v17 }
 0x890   : > { %v1002_v20 = vpack.c.bf16 %v1001_v19, %v1001_v19 }
 0x892   : > { %1004 = vst.msk [vmem:[%s336_s13] sm:$0xf] %vm1003_vm5, %v1002_v20 }
 0x893 PF: > { %s16_s23 = sadd.s32 1, %s1309_s23   ;;  %s1523_s21 = smov %s1305_s22 }
 0x894   : > { %p13_p5 = scmp.ge.s32.totalorder %s16_s23, 4   ;;  %s1524_s22 = smov %s1526_s24 }
 0x896   :  { %15 = sbr.rel (!%p13_p5) target bundleno = 2 (0x2), region = 83 }

// kernel: decoder_forward.25
= control target key start
LH: loop header
LB: loop body
LE: loop exit
PB: predicated region body
PF: predicated region fallthrough
CT: control target
= control target key end

     0   :  { %vm21_vm0 = vcmask 261120   ;;  %s188_s0 = inlined_call_operand.vmem [shape: bf16[16,32], index: 0, kind: input, shape index: {}]   ;;  %s189_s1 = inlined_call_operand.vmem [shape: f32[1,32], index: 1, kind: input, shape index: {}]   ;;  %s190_s2 = inlined_call_operand.vmem [shape: f32[1,32], index: 2, kind: input, shape index: {}]   ;;  %s191_s3 = inlined_call_operand.hbm [shape: f32[16,32], index: 3, kind: output, shape index: {}]  }
   0x1   :  { %v100_v0 = vld [vmem:[%s188_s0] sm:$0xff]  }
   0x2   :  { %8 = vsyncpa [#allocation3], 0  ;;  %v101_v1 = vunpack.c.l.bf16 %v100_v0  ;;  %v102_v2 = vunpack.c.h.bf16 %v100_v0  ;;  %v97_v31 = vld [vmem:[%s189_s1] ss:$0 sm:$0xff]  ;;  %s138_s17 = smov [#allocation2]  }
   0x3   :  { %v98_v34 = vld [vmem:[%s190_s2] ss:$0 sm:$0xff]  ;;  %s86_s18 = sshll.u32 %s138_s17, 4  ;;  %s87_s18 = int_to_ptr.vmem [resolvable:$true] %s86_s18 }
   0x4   :  { %v22_v3 = vsel %vm21_vm0, %v101_v1, 0.0  ;;  %v25_v4 = vsel %vm21_vm0, %v102_v2, 0.0  ;;  %s114_s1 = scalar_lea.vmem %s87_s18, 256  ;;  %p119_p1 = scmp.lt.s32.totalorder %s87_s18, %s87_s18 }
   0x5   :  { %23 = vadd.xlane.f32.xlu0 %v22_v3  ;;  %p115_p0 = scmp.ne.s32.totalorder %s87_s18, %s114_s1  ;;  %p120_p2 = scmp.lt.s32.totalorder %s114_s1, %s114_s1 }
   0x7   :  { %p121_p3 = por %p120_p2, %p119_p1 }
   0x9   :  { %26 = vadd.xlane.f32.xlu0 %v25_v4  ;;  %p122_p4 = pnand %p121_p3, %p115_p0 }
  0x92   :  { %v24_v5 = vpop.xlane.xlu0 %23 }
  0x93   :  { %v29_v6 = vmul.f32 0.03125, %v24_v5 }
  0x95   :  { %v31_v7 = vsub.f32 %v101_v1, %v29_v6 }
  0x96   :  { %v27_v8 = vpop.xlane.xlu0 %26 }
  0x97   :  { %v30_v9 = vmul.f32 0.03125, %v27_v8  ;;  %v33_v10 = vmul.f32 %v31_v7, %v31_v7  ;;  %v67_v32 = vmul.f32 %v97_v31, %v31_v7 }
  0x99   :  { %v32_v11 = vsub.f32 %v102_v2, %v30_v9  ;;  %v35_v12 = vsel %vm21_vm0, %v33_v10, 0.0 }
  0x9a   :  { %36 = vadd.xlane.f32.xlu1 %v35_v12 }
  0x9b   :  { %v34_v13 = vmul.f32 %v32_v11, %v32_v11  ;;  %v68_v36 = vmul.f32 %v97_v31, %v32_v11 }
  0x9d   :  { %v38_v14 = vsel %vm21_vm0, %v34_v13, 0.0 }
  0x9e   :  { %39 = vadd.xlane.f32.xlu1 %v38_v14 }
 0x127   :  { %v37_v15 = vpop.xlane.xlu1 %36 }
 0x128   :  { %v41_v16 = vmul.f32 0.032258064, %v37_v15 }
 0x12a   :  { %106 = vrsqrt.f32 %v41_v16  ;;  %vm45_vm1 = vcmp.eq.f32.partialorder %v41_v16, inf  ;;  %v48_v21 = vand.u32 2147483648, %v41_v16  ;;  %vm47_vm2 = vcmp.eq.f32.partialorder %v41_v16, 0.0 }
 0x12b   :  { %v40_v17 = vpop.xlane.xlu1 %39 }
 0x12c   :  { %v42_v18 = vmul.f32 0.032258064, %v40_v17 }
 0x12e   :  { %108 = vrsqrt.f32 %v42_v18  ;;  %vm52_vm3 = vcmp.eq.f32.partialorder %v42_v18, inf  ;;  %v55_v27 = vand.u32 2147483648, %v42_v18  ;;  %vm54_vm4 = vcmp.eq.f32.partialorder %v42_v18, 0.0 }
 0x134   :  { %v107_v19 = vpop.eup %106 }
 0x135   :  { %v44_v20 = vmul.f32 %v107_v19, %v41_v16 }
 0x137   :  { %v46_v22 = vsel %vm45_vm1, %v41_v16, %v44_v20 }
 0x138   :  { %v109_v23 = vpop.eup %108  ;;  %v49_v24 = vsel %vm47_vm2, %v48_v21, %v46_v22 }
 0x139   :  { %v57_v25 = vadd.f32 1e-06, %v49_v24  ;;  %v51_v26 = vmul.f32 %v109_v23, %v42_v18 }
 0x13b   :  { %110 = vrcp.f32 %v57_v25  ;;  %v53_v28 = vsel %vm52_vm3, %v42_v18, %v51_v26 }
 0x13c   :  { %v56_v29 = vsel %vm54_vm4, %v55_v27, %v53_v28 }
 0x13d   :  { %v58_v30 = vadd.f32 1e-06, %v56_v29 }
 0x13f   :  { %112 = vrcp.f32 %v58_v30 }
 0x145   :  { %v111_v33 = vpop.eup %110 }
 0x146   :  { %v69_v35 = vmul.f32 %v111_v33, %v67_v32 }
 0x148   :  { %v77_v37 = vadd.f32 %v98_v34, %v69_v35 }
 0x149   :  { %v113_v38 = vpop.eup %112 }
 0x14a   :  { %v70_v39 = vmul.f32 %v113_v38, %v68_v36  ;;  %79 = vst.msk [vmem:[#allocation2] sm:$0xff] %vm21_vm0, %v77_v37 }
 0x14c   :  { %v78_v40 = vadd.f32 %v98_v34, %v70_v39 }
 0x14e   :  { %80 = vst.msk [vmem:[#allocation2 + $0x8] sm:$0xff] %vm21_vm0, %v78_v40 }
 0x14f   :  { %125 = shalt.err (!%p122_p4)
}
 0x150   :  { %s126_s20 = scalar_lea.hbm %s191_s3, 256 }
 0x151   :  { %p127_p5 = scmp.ne.s32.totalorder %s191_s3, %s126_s20  ;;  %p130_p6 = scmp.lt.u32.totalorder %s126_s20, %s191_s3 }
 0x153   :  { %p132_p7 = pnand %p130_p6, %p127_p5 }
 0x155   :  { %135 = shalt.err (!%p132_p7)
}
 0x156   :  { %s139_s25 = smov 128   ;;  %s140_s26 = smov 8  }
 0x157   :  { %92 = dma.vmem_to_hbm [thread:$0]  %s87_s18, 256, %s191_s3, [#allocation3], %s139_s25, %s139_s25, %s140_s26  }
 0x158   :  { %136 = dma.done.wait [#allocation3], 256  }
 0x159   :  { %137 = vsyncadd [#allocation3], 4294967040 }
 0x15a   :  { %96 = vsyncpa [#allocation3], 1 }

</bundles_post_ra>
